<compile_context>
chip_gen: v6e
topology: v6e:2x2x1
jax: 0.10.0
libtpu: 0.0.40
codegen_flags: <defaults>
</compile_context>

<pallas_src>
import jax
import jax.numpy as jnp
from jax import lax
from jax.experimental import pallas as pl
from jax.experimental.pallas import tpu as pltpu


def text_model_kernel(ids_ref, mask_ref, table_ref,
                      w_enc_ref, b_enc_ref,
                      w_ad_ref, b_ad_ref,
                      w_cls_ref, b_cls_ref,
                      out_ref):
    ids = ids_ref[...]                                  # [TB, S] int32
    mask = mask_ref[...]                                # [TB, S] f32 (0/1)
    tb, s_len = ids.shape
    vp = table_ref.shape[0]                             # lane-padded vocab

    # --- text_extractor: masked mean pool of embeddings ----------------------
    # Fold the mean-pool denominator into the per-token weights so the
    # counts @ table matmul directly yields the mean-pooled embedding.
    denom = jnp.maximum(jnp.sum(mask, axis=1, keepdims=True), 1.0)   # [TB, 1]
    maskw = mask / denom                                              # exact

    # Weighted token-count matrix [TB, Vp], built column-by-column over S to
    # avoid any [TB, S, Vp] 3-D intermediate (live state stays at O(TB*Vp)).
    lane_iota = lax.broadcasted_iota(jnp.int32, (tb, vp), 1)          # hoisted
    counts = jnp.zeros((tb, vp), jnp.float32)
    for s in range(s_len):                              # static unroll (small S)
        counts = counts + jnp.where(ids[:, s:s + 1] == lane_iota,
                                    maskw[:, s:s + 1], 0.0)

    # counts and table stay f32 for exactness of the gather+mean (MXU f32).
    pooled = jnp.dot(counts, table_ref[...],
                     preferred_element_type=jnp.float32)              # [TB, H]

    feat = jnp.tanh(
        jnp.dot(pooled.astype(jnp.bfloat16), w_enc_ref[...],
                preferred_element_type=jnp.float32) + b_enc_ref[...]
    )                                                                 # [TB, H]

    # --- text_adaptor: Linear + ReLU -----------------------------------------
    adapted = jnp.maximum(
        jnp.dot(feat.astype(jnp.bfloat16), w_ad_ref[...],
                preferred_element_type=jnp.float32) + b_ad_ref[...],
        0.0,
    )                                                                 # [TB, A]

    # --- classifier: Linear -> lane-dense padded logits slab ------------------
    out_ref[...] = (
        jnp.dot(adapted.astype(jnp.bfloat16), w_cls_ref[...],
                preferred_element_type=jnp.float32) + b_cls_ref[...]
    )                                                                 # [TB, 128]


def _resident_spec(shape):
    """Constant-index (VMEM-resident) block; single-buffered when supported."""
    const2 = lambda i: (0, 0)
    if hasattr(pl, "Buffered"):
        try:
            return pl.BlockSpec(shape, const2, pipeline_mode=pl.Buffered(1))
        except TypeError:
            pass
    return pl.BlockSpec(shape, const2)


def _vmem_budget_bytes():
    """Generation-aware VMEM budget (v7x has 64 MiB physical vs 128 MiB)."""
    try:
        cap = pltpu.get_tpu_info().vmem_capacity_bytes
    except Exception:
        return 32 * 1024 * 1024
    if cap <= 64 * 1024 * 1024:
        return 44 * 1024 * 1024          # v7x: leave headroom under 64 MiB
    return 96 * 1024 * 1024              # v5e / v6e: 128 MiB physical


def text_model_forward(x_text, attention_mask, params, *, tb=None, c_pad=128):
    """x_text: int32 [B, S] token ids; attention_mask: [B, S] (0/1)."""
    B, S = x_text.shape
    V, H = params["emb_table"].shape
    A = params["w_ad"].shape[1]
    C = params["w_cls"].shape[1]

    # Batch tile: 128 fills the MXU M dim on every generation; 256 for large B
    # (v6e native 256-row pass) while keeping the grid length >= 2 so both v7x
    # TensorCores get work under dimension_semantics=("parallel",).
    if tb is None:
        tb = 256 if B >= 512 else 128

    B_pad = pl.cdiv(B, tb) * tb
    V_pad = pl.cdiv(V, 128) * 128                       # lane-dense vocab

    ids = jnp.zeros((B_pad, S), jnp.int32).at[:B].set(x_text.astype(jnp.int32))
    mask = jnp.zeros((B_pad, S), jnp.float32).at[:B].set(
        attention_mask.astype(jnp.float32))

    # Embedding table stays f32 (pooling matmul exactness); Linear weights go
    # bf16 for single-pass MXU matmuls; biases stay f32 (added post-accum).
    table_pad = jnp.zeros((V_pad, H), jnp.float32).at[:V].set(
        params["emb_table"].astype(jnp.float32))
    w_enc = params["w_enc"].astype(jnp.bfloat16)
    w_ad = params["w_ad"].astype(jnp.bfloat16)
    w_cls_pad = jnp.zeros((A, c_pad), jnp.bfloat16).at[:, :C].set(
        params["w_cls"].astype(jnp.bfloat16))
    b_cls_pad = jnp.zeros((1, c_pad), jnp.float32).at[:, :C].set(params["b_cls"])

    batch_blk = lambda i: (i, 0)

    out_pad = pl.pallas_call(
        text_model_kernel,
        out_shape=jax.ShapeDtypeStruct((B_pad, c_pad), jnp.float32),
        grid_spec=pltpu.PrefetchScalarGridSpec(
            num_scalar_prefetch=0,
            grid=(B_pad // tb,),
            in_specs=[
                pl.BlockSpec((tb, S), batch_blk),        # token ids
                pl.BlockSpec((tb, S), batch_blk),        # attention mask
                _resident_spec((V_pad, H)),              # embedding table
                _resident_spec((H, H)),                  # w_enc
                _resident_spec((1, H)),                  # b_enc
                _resident_spec((H, A)),                  # w_ad
                _resident_spec((1, A)),                  # b_ad
                _resident_spec((A, c_pad)),              # w_cls (lane-padded)
                _resident_spec((1, c_pad)),              # b_cls (lane-padded)
            ],
            out_specs=pl.BlockSpec((tb, c_pad), batch_blk),
        ),
        compiler_params=pltpu.CompilerParams(
            dimension_semantics=("parallel",),           # megacore / 2 TCs
            vmem_limit_bytes=_vmem_budget_bytes(),
        ),
    )(ids, mask, table_pad,
      w_enc, params["b_enc"], w_ad, params["b_ad"], w_cls_pad, b_cls_pad)

    return out_pad[:B, :C]


def init_params(key, vocab=64, hidden=32, adapted=32, num_classes=2):
    ks = jax.random.split(key, 4)
    scale = 0.02
    return {
        "emb_table": scale * jax.random.normal(ks[0], (vocab, hidden), jnp.float32),
        "w_enc": scale * jax.random.normal(ks[1], (hidden, hidden), jnp.float32),
        "b_enc": jnp.zeros((1, hidden), jnp.float32),
        "w_ad": scale * jax.random.normal(ks[2], (hidden, adapted), jnp.float32),
        "b_ad": jnp.zeros((1, adapted), jnp.float32),
        "w_cls": scale * jax.random.normal(ks[3], (adapted, num_classes), jnp.float32),
        "b_cls": jnp.zeros((1, num_classes), jnp.float32),
    }


def _reference_forward(x_text, attention_mask, params):
    """Pure-JAX f32 reference of the same forward (for a tolerance check)."""
    emb = params["emb_table"][x_text]                               # [B, S, H]
    m = attention_mask[..., None]
    denom = jnp.maximum(attention_mask.sum(axis=1, keepdims=True), 1.0)
    pooled = (emb * m).sum(axis=1) / denom
    feat = jnp.tanh(pooled @ params["w_enc"] + params["b_enc"])
    adapted = jnp.maximum(feat @ params["w_ad"] + params["b_ad"], 0.0)
    return adapted @ params["w_cls"] + params["b_cls"]


if __name__ == "__main__":
    key = jax.random.PRNGKey(0)
    k_tok, k_par = jax.random.split(key, 2)

    B, S, V, H, A, C = 2, 8, 64, 32, 32, 2

    x_text = jax.random.randint(k_tok, (B, S), 0, V, dtype=jnp.int32)
    # Deterministic attention mask: first few tokens valid per row.
    lengths = jnp.array([5, 8], dtype=jnp.int32)
    attention_mask = (jnp.arange(S)[None, :] < lengths[:, None]).astype(jnp.float32)

    params = init_params(k_par, vocab=V, hidden=H, adapted=A, num_classes=C)

    out = text_model_forward(x_text, attention_mask, params)
    out = jax.block_until_ready(out)

    assert out.shape == (B, C) and out.dtype == jnp.float32
    assert bool(jnp.all(jnp.isfinite(out)))

    ref = _reference_forward(x_text, attention_mask, params)
    # bf16 MXU operands in the Linear layers -> ~1e-2-relative deviations max.
    assert bool(jnp.allclose(out, ref, atol=5e-2, rtol=5e-2))

    print("KERNEL_OK")
</pallas_src>

<mosaic_0001>
module attributes {stable_mosaic.version = 11 : i64} {
  func.func @text_model_kernel(%arg0: i32, %arg1: memref<128x8xi32, #tpu.memory_space<vmem>>, %arg2: memref<128x8xf32, #tpu.memory_space<vmem>>, %arg3: memref<128x32xf32, #tpu.memory_space<vmem>>, %arg4: memref<32x32xbf16, #tpu.memory_space<vmem>>, %arg5: memref<1x32xf32, #tpu.memory_space<vmem>>, %arg6: memref<32x32xbf16, #tpu.memory_space<vmem>>, %arg7: memref<1x32xf32, #tpu.memory_space<vmem>>, %arg8: memref<32x128xbf16, #tpu.memory_space<vmem>>, %arg9: memref<1x128xf32, #tpu.memory_space<vmem>>, %arg10: memref<128x128xf32, #tpu.memory_space<vmem>>) attributes {dimension_semantics = [#tpu.dimension_semantics<parallel>], iteration_bounds = array<i64: 1>, scalar_prefetch = 0 : i64, scratch_operands = 0 : i64, tpu.core_type = #tpu.core_type<tc>, window_params = [{transform_indices = @transform_0, window_bounds = array<i64: 128, 8>}, {transform_indices = @transform_1, window_bounds = array<i64: 128, 8>}, {pipeline_mode = #tpu.pipeline_mode<synchronous>, transform_indices = @transform_2, window_bounds = array<i64: 128, 32>}, {pipeline_mode = #tpu.pipeline_mode<synchronous>, transform_indices = @transform_3, window_bounds = array<i64: 32, 32>}, {pipeline_mode = #tpu.pipeline_mode<synchronous>, transform_indices = @transform_4, window_bounds = array<i64: 1, 32>}, {pipeline_mode = #tpu.pipeline_mode<synchronous>, transform_indices = @transform_5, window_bounds = array<i64: 32, 32>}, {pipeline_mode = #tpu.pipeline_mode<synchronous>, transform_indices = @transform_6, window_bounds = array<i64: 1, 32>}, {pipeline_mode = #tpu.pipeline_mode<synchronous>, transform_indices = @transform_7, window_bounds = array<i64: 32, 128>}, {pipeline_mode = #tpu.pipeline_mode<synchronous>, transform_indices = @transform_8, window_bounds = array<i64: 1, 128>}, {transform_indices = @transform_9, window_bounds = array<i64: 128, 128>}]} {
    %c0 = arith.constant 0 : index
    %c0_0 = arith.constant 0 : index
    %0 = vector.load %arg1[%c0, %c0_0] : memref<128x8xi32, #tpu.memory_space<vmem>>, vector<128x8xi32>
    %c0_1 = arith.constant 0 : index
    %c0_2 = arith.constant 0 : index
    %1 = vector.load %arg2[%c0_1, %c0_2] : memref<128x8xf32, #tpu.memory_space<vmem>>, vector<128x8xf32>
    %cst = arith.constant dense<0.000000e+00> : vector<128xf32>
    %2 = vector.multi_reduction <add>, %1, %cst [1] : vector<128x8xf32> to vector<128xf32>
    %3 = vector.shape_cast %2 : vector<128xf32> to vector<128x1xf32>
    %cst_3 = arith.constant 1.000000e+00 : f32
    %4 = vector.broadcast %cst_3 : f32 to vector<128x1xf32>
    %5 = arith.maximumf %3, %4 : vector<128x1xf32>
    %6 = vector.broadcast %5 : vector<128x1xf32> to vector<128x8xf32>
    %7 = arith.divf %1, %6 : vector<128x8xf32>
    %8 = tpu.iota {dimensions = array<i32: 1>} : vector<128x128xi32>
    %cst_4 = arith.constant 0.000000e+00 : f32
    %9 = vector.broadcast %cst_4 : f32 to vector<128x128xf32>
    %10 = vector.extract_strided_slice %0 {offsets = [0, 0], sizes = [128, 1], strides = [1, 1]} : vector<128x8xi32> to vector<128x1xi32>
    %11 = vector.broadcast %10 : vector<128x1xi32> to vector<128x128xi32>
    %12 = arith.cmpi eq, %11, %8 : vector<128x128xi32>
    %13 = vector.extract_strided_slice %7 {offsets = [0, 0], sizes = [128, 1], strides = [1, 1]} : vector<128x8xf32> to vector<128x1xf32>
    %cst_5 = arith.constant 0.000000e+00 : f32
    %14 = vector.shape_cast %13 : vector<128x1xf32> to vector<128x1xf32>
    %15 = vector.broadcast %14 : vector<128x1xf32> to vector<128x128xf32>
    %16 = vector.broadcast %cst_5 : f32 to vector<128x128xf32>
    %17 = arith.select %12, %15, %16 : vector<128x128xi1>, vector<128x128xf32>
    %18 = arith.addf %9, %17 : vector<128x128xf32>
    %19 = vector.extract_strided_slice %0 {offsets = [0, 1], sizes = [128, 1], strides = [1, 1]} : vector<128x8xi32> to vector<128x1xi32>
    %20 = vector.broadcast %19 : vector<128x1xi32> to vector<128x128xi32>
    %21 = arith.cmpi eq, %20, %8 : vector<128x128xi32>
    %22 = vector.extract_strided_slice %7 {offsets = [0, 1], sizes = [128, 1], strides = [1, 1]} : vector<128x8xf32> to vector<128x1xf32>
    %cst_6 = arith.constant 0.000000e+00 : f32
    %23 = vector.shape_cast %22 : vector<128x1xf32> to vector<128x1xf32>
    %24 = vector.broadcast %23 : vector<128x1xf32> to vector<128x128xf32>
    %25 = vector.broadcast %cst_6 : f32 to vector<128x128xf32>
    %26 = arith.select %21, %24, %25 : vector<128x128xi1>, vector<128x128xf32>
    %27 = arith.addf %18, %26 : vector<128x128xf32>
    %28 = vector.extract_strided_slice %0 {offsets = [0, 2], sizes = [128, 1], strides = [1, 1]} : vector<128x8xi32> to vector<128x1xi32>
    %29 = vector.broadcast %28 : vector<128x1xi32> to vector<128x128xi32>
    %30 = arith.cmpi eq, %29, %8 : vector<128x128xi32>
    %31 = vector.extract_strided_slice %7 {offsets = [0, 2], sizes = [128, 1], strides = [1, 1]} : vector<128x8xf32> to vector<128x1xf32>
    %cst_7 = arith.constant 0.000000e+00 : f32
    %32 = vector.shape_cast %31 : vector<128x1xf32> to vector<128x1xf32>
    %33 = vector.broadcast %32 : vector<128x1xf32> to vector<128x128xf32>
    %34 = vector.broadcast %cst_7 : f32 to vector<128x128xf32>
    %35 = arith.select %30, %33, %34 : vector<128x128xi1>, vector<128x128xf32>
    %36 = arith.addf %27, %35 : vector<128x128xf32>
    %37 = vector.extract_strided_slice %0 {offsets = [0, 3], sizes = [128, 1], strides = [1, 1]} : vector<128x8xi32> to vector<128x1xi32>
    %38 = vector.broadcast %37 : vector<128x1xi32> to vector<128x128xi32>
    %39 = arith.cmpi eq, %38, %8 : vector<128x128xi32>
    %40 = vector.extract_strided_slice %7 {offsets = [0, 3], sizes = [128, 1], strides = [1, 1]} : vector<128x8xf32> to vector<128x1xf32>
    %cst_8 = arith.constant 0.000000e+00 : f32
    %41 = vector.shape_cast %40 : vector<128x1xf32> to vector<128x1xf32>
    %42 = vector.broadcast %41 : vector<128x1xf32> to vector<128x128xf32>
    %43 = vector.broadcast %cst_8 : f32 to vector<128x128xf32>
    %44 = arith.select %39, %42, %43 : vector<128x128xi1>, vector<128x128xf32>
    %45 = arith.addf %36, %44 : vector<128x128xf32>
    %46 = vector.extract_strided_slice %0 {offsets = [0, 4], sizes = [128, 1], strides = [1, 1]} : vector<128x8xi32> to vector<128x1xi32>
    %47 = vector.broadcast %46 : vector<128x1xi32> to vector<128x128xi32>
    %48 = arith.cmpi eq, %47, %8 : vector<128x128xi32>
    %49 = vector.extract_strided_slice %7 {offsets = [0, 4], sizes = [128, 1], strides = [1, 1]} : vector<128x8xf32> to vector<128x1xf32>
    %cst_9 = arith.constant 0.000000e+00 : f32
    %50 = vector.shape_cast %49 : vector<128x1xf32> to vector<128x1xf32>
    %51 = vector.broadcast %50 : vector<128x1xf32> to vector<128x128xf32>
    %52 = vector.broadcast %cst_9 : f32 to vector<128x128xf32>
    %53 = arith.select %48, %51, %52 : vector<128x128xi1>, vector<128x128xf32>
    %54 = arith.addf %45, %53 : vector<128x128xf32>
    %55 = vector.extract_strided_slice %0 {offsets = [0, 5], sizes = [128, 1], strides = [1, 1]} : vector<128x8xi32> to vector<128x1xi32>
    %56 = vector.broadcast %55 : vector<128x1xi32> to vector<128x128xi32>
    %57 = arith.cmpi eq, %56, %8 : vector<128x128xi32>
    %58 = vector.extract_strided_slice %7 {offsets = [0, 5], sizes = [128, 1], strides = [1, 1]} : vector<128x8xf32> to vector<128x1xf32>
    %cst_10 = arith.constant 0.000000e+00 : f32
    %59 = vector.shape_cast %58 : vector<128x1xf32> to vector<128x1xf32>
    %60 = vector.broadcast %59 : vector<128x1xf32> to vector<128x128xf32>
    %61 = vector.broadcast %cst_10 : f32 to vector<128x128xf32>
    %62 = arith.select %57, %60, %61 : vector<128x128xi1>, vector<128x128xf32>
    %63 = arith.addf %54, %62 : vector<128x128xf32>
    %64 = vector.extract_strided_slice %0 {offsets = [0, 6], sizes = [128, 1], strides = [1, 1]} : vector<128x8xi32> to vector<128x1xi32>
    %65 = vector.broadcast %64 : vector<128x1xi32> to vector<128x128xi32>
    %66 = arith.cmpi eq, %65, %8 : vector<128x128xi32>
    %67 = vector.extract_strided_slice %7 {offsets = [0, 6], sizes = [128, 1], strides = [1, 1]} : vector<128x8xf32> to vector<128x1xf32>
    %cst_11 = arith.constant 0.000000e+00 : f32
    %68 = vector.shape_cast %67 : vector<128x1xf32> to vector<128x1xf32>
    %69 = vector.broadcast %68 : vector<128x1xf32> to vector<128x128xf32>
    %70 = vector.broadcast %cst_11 : f32 to vector<128x128xf32>
    %71 = arith.select %66, %69, %70 : vector<128x128xi1>, vector<128x128xf32>
    %72 = arith.addf %63, %71 : vector<128x128xf32>
    %73 = vector.extract_strided_slice %0 {offsets = [0, 7], sizes = [128, 1], strides = [1, 1]} : vector<128x8xi32> to vector<128x1xi32>
    %74 = vector.broadcast %73 : vector<128x1xi32> to vector<128x128xi32>
    %75 = arith.cmpi eq, %74, %8 : vector<128x128xi32>
    %76 = vector.extract_strided_slice %7 {offsets = [0, 7], sizes = [128, 1], strides = [1, 1]} : vector<128x8xf32> to vector<128x1xf32>
    %cst_12 = arith.constant 0.000000e+00 : f32
    %77 = vector.shape_cast %76 : vector<128x1xf32> to vector<128x1xf32>
    %78 = vector.broadcast %77 : vector<128x1xf32> to vector<128x128xf32>
    %79 = vector.broadcast %cst_12 : f32 to vector<128x128xf32>
    %80 = arith.select %75, %78, %79 : vector<128x128xi1>, vector<128x128xf32>
    %81 = arith.addf %72, %80 : vector<128x128xf32>
    %c0_13 = arith.constant 0 : index
    %c0_14 = arith.constant 0 : index
    %82 = vector.load %arg3[%c0_13, %c0_14] : memref<128x32xf32, #tpu.memory_space<vmem>>, vector<128x32xf32>
    %cst_15 = arith.constant dense<0.000000e+00> : vector<128x32xf32>
    %83 = tpu.matmul %81, %82, %cst_15 {dimension_numbers = #tpu.dot_dimension_numbers<[1], [0], [0], [1], [0, 0, 1, 1], [], []>} : vector<128x128xf32>, vector<128x32xf32>, vector<128x32xf32> -> vector<128x32xf32>
    %84 = arith.truncf %83 : vector<128x32xf32> to vector<128x32xbf16>
    %c0_16 = arith.constant 0 : index
    %c0_17 = arith.constant 0 : index
    %85 = vector.load %arg4[%c0_16, %c0_17] : memref<32x32xbf16, #tpu.memory_space<vmem>>, vector<32x32xbf16>
    %cst_18 = arith.constant dense<0.000000e+00> : vector<128x32xf32>
    %86 = tpu.matmul %84, %85, %cst_18 {dimension_numbers = #tpu.dot_dimension_numbers<[1], [0], [0], [1], [0, 0, 1, 1], [], []>} : vector<128x32xbf16>, vector<32x32xbf16>, vector<128x32xf32> -> vector<128x32xf32>
    %c0_19 = arith.constant 0 : index
    %c0_20 = arith.constant 0 : index
    %87 = vector.load %arg5[%c0_19, %c0_20] : memref<1x32xf32, #tpu.memory_space<vmem>>, vector<1x32xf32>
    %88 = vector.broadcast %87 : vector<1x32xf32> to vector<128x32xf32>
    %89 = arith.addf %86, %88 : vector<128x32xf32>
    %90 = math.tanh %89 : vector<128x32xf32>
    %91 = arith.truncf %90 : vector<128x32xf32> to vector<128x32xbf16>
    %c0_21 = arith.constant 0 : index
    %c0_22 = arith.constant 0 : index
    %92 = vector.load %arg6[%c0_21, %c0_22] : memref<32x32xbf16, #tpu.memory_space<vmem>>, vector<32x32xbf16>
    %cst_23 = arith.constant dense<0.000000e+00> : vector<128x32xf32>
    %93 = tpu.matmul %91, %92, %cst_23 {dimension_numbers = #tpu.dot_dimension_numbers<[1], [0], [0], [1], [0, 0, 1, 1], [], []>} : vector<128x32xbf16>, vector<32x32xbf16>, vector<128x32xf32> -> vector<128x32xf32>
    %c0_24 = arith.constant 0 : index
    %c0_25 = arith.constant 0 : index
    %94 = vector.load %arg7[%c0_24, %c0_25] : memref<1x32xf32, #tpu.memory_space<vmem>>, vector<1x32xf32>
    %95 = vector.broadcast %94 : vector<1x32xf32> to vector<128x32xf32>
    %96 = arith.addf %93, %95 : vector<128x32xf32>
    %cst_26 = arith.constant 0.000000e+00 : f32
    %97 = vector.broadcast %cst_26 : f32 to vector<128x32xf32>
    %98 = arith.maximumf %96, %97 : vector<128x32xf32>
    %99 = arith.truncf %98 : vector<128x32xf32> to vector<128x32xbf16>
    %c0_27 = arith.constant 0 : index
    %c0_28 = arith.constant 0 : index
    %100 = vector.load %arg8[%c0_27, %c0_28] : memref<32x128xbf16, #tpu.memory_space<vmem>>, vector<32x128xbf16>
    %cst_29 = arith.constant dense<0.000000e+00> : vector<128x128xf32>
    %101 = tpu.matmul %99, %100, %cst_29 {dimension_numbers = #tpu.dot_dimension_numbers<[1], [0], [0], [1], [0, 0, 1, 1], [], []>} : vector<128x32xbf16>, vector<32x128xbf16>, vector<128x128xf32> -> vector<128x128xf32>
    %c0_30 = arith.constant 0 : index
    %c0_31 = arith.constant 0 : index
    %102 = vector.load %arg9[%c0_30, %c0_31] : memref<1x128xf32, #tpu.memory_space<vmem>>, vector<1x128xf32>
    %103 = vector.broadcast %102 : vector<1x128xf32> to vector<128x128xf32>
    %104 = arith.addf %101, %103 : vector<128x128xf32>
    %c0_32 = arith.constant 0 : index
    %c0_33 = arith.constant 0 : index
    %105 = vector.load %arg10[%c0_32, %c0_33] : memref<128x128xf32, #tpu.memory_space<vmem>>, vector<128x128xf32>
    tpu.vector_store %arg10[%c0_32, %c0_33], %104 {strides = array<i32>} : memref<128x128xf32, #tpu.memory_space<vmem>>, vector<128x128xf32>,
    return
  }
  func.func @transform_0(%arg0: i32) -> (i32, i32) {
    %c0_i32 = arith.constant 0 : i32
    %c0_i32_0 = arith.constant 0 : i32
    return %arg0, %c0_i32 : i32, i32
  }
  func.func @transform_1(%arg0: i32) -> (i32, i32) {
    %c0_i32 = arith.constant 0 : i32
    %c0_i32_0 = arith.constant 0 : i32
    return %arg0, %c0_i32 : i32, i32
  }
  func.func @transform_2(%arg0: i32) -> (i32, i32) {
    %c0_i32 = arith.constant 0 : i32
    %c0_i32_0 = arith.constant 0 : i32
    %c0_i32_1 = arith.constant 0 : i32
    return %c0_i32, %c0_i32_0 : i32, i32
  }
  func.func @transform_3(%arg0: i32) -> (i32, i32) {
    %c0_i32 = arith.constant 0 : i32
    %c0_i32_0 = arith.constant 0 : i32
    %c0_i32_1 = arith.constant 0 : i32
    return %c0_i32, %c0_i32_0 : i32, i32
  }
  func.func @transform_4(%arg0: i32) -> (i32, i32) {
    %c0_i32 = arith.constant 0 : i32
    %c0_i32_0 = arith.constant 0 : i32
    %c0_i32_1 = arith.constant 0 : i32
    return %c0_i32, %c0_i32_0 : i32, i32
  }
  func.func @transform_5(%arg0: i32) -> (i32, i32) {
    %c0_i32 = arith.constant 0 : i32
    %c0_i32_0 = arith.constant 0 : i32
    %c0_i32_1 = arith.constant 0 : i32
    return %c0_i32, %c0_i32_0 : i32, i32
  }
  func.func @transform_6(%arg0: i32) -> (i32, i32) {
    %c0_i32 = arith.constant 0 : i32
    %c0_i32_0 = arith.constant 0 : i32
    %c0_i32_1 = arith.constant 0 : i32
    return %c0_i32, %c0_i32_0 : i32, i32
  }
  func.func @transform_7(%arg0: i32) -> (i32, i32) {
    %c0_i32 = arith.constant 0 : i32
    %c0_i32_0 = arith.constant 0 : i32
    %c0_i32_1 = arith.constant 0 : i32
    return %c0_i32, %c0_i32_0 : i32, i32
  }
  func.func @transform_8(%arg0: i32) -> (i32, i32) {
    %c0_i32 = arith.constant 0 : i32
    %c0_i32_0 = arith.constant 0 : i32
    %c0_i32_1 = arith.constant 0 : i32
    return %c0_i32, %c0_i32_0 : i32, i32
  }
  func.func @transform_9(%arg0: i32) -> (i32, i32) {
    %c0_i32 = arith.constant 0 : i32
    %c0_i32_0 = arith.constant 0 : i32
    return %arg0, %c0_i32 : i32, i32
  }
}

</mosaic_0001>

<bundles_post_ra>
// kernel: tpu_custom_call.1
= control target key start
LH: loop header
LB: loop body
LE: loop exit
PB: predicated region body
PF: predicated region fallthrough
CT: control target
= control target key end

     0   :  { %vm66_vm0 = vcmask 64512   ;;  %v2617_v6 = vmov 0   ;;  %v4201_v7 = vmov 1   ;;  %s4179_s0 = inlined_call_operand.vmem [shape: s32[128,8], index: 0, kind: input, shape index: {}]   ;;  %s4180_s1 = inlined_call_operand.vmem [shape: f32[128,8], index: 1, kind: input, shape index: {}]   ;;  %s4181_s2 = inlined_call_operand.vmem [shape: f32[128,32], index: 2, kind: input, shape index: {}]   ;;  %s4182_s3 = inlined_call_operand.vmem [shape: bf16[32,32], index: 3, kind: input, shape index: {}]   ;;  %s4183_s4 = inlined_call_operand.vmem [shape: f32[1,32], index: 4, kind: input, shape index: {}]   ;;  %s4184_s5 = inlined_call_operand.vmem [shape: bf16[32,32], index: 5, kind: input, shape index: {}]   ;;  %s4185_s6 = inlined_call_operand.vmem [shape: f32[1,32], index: 6, kind: input, shape index: {}]   ;;  %s4186_s7 = inlined_call_operand.vmem [shape: bf16[32,128], index: 7, kind: input, shape index: {}]   ;;  %s4187_s8 = inlined_call_operand.vmem [shape: f32[1,128], index: 8, kind: input, shape index: {}]   ;;  %s4188_s9 = inlined_call_operand.hbm [shape: f32[128,128], index: 9, kind: output, shape index: {}]  }
   0x1   :  { %v2681_v0 = vld [vmem:[%s4180_s1] sm:$0xff]  ;;  %v2686_v1 = vld [vmem:[%s4180_s1 + $0x10] sm:$0xff]  ;;  %v2691_v2 = vld [vmem:[%s4180_s1 + $0x8] sm:$0xff]  ;;  %2369 = vset.pattern.permute.xlu1 %v2617_v6  ;;  %2371 = vset.pattern.permute.xlu0 %v4201_v7 }
   0x2   :  { %v67_v3 = vsel %vm66_vm0, %v2681_v0, 0.0  ;;  %v73_v4 = vsel %vm66_vm0, %v2686_v1, 0.0  ;;  %v2700_v5 = vld [vmem:[%s4180_s1 + $0x18] sm:$0xff]  ;;  %v70_v8 = vsel %vm66_vm0, %v2691_v2, 0.0  ;;  %v2711_v10 = vld [vmem:[%s4180_s1 + $0x20] sm:$0xff]  ;;  %v2716_v11 = vld [vmem:[%s4180_s1 + $0x28] sm:$0xff] }
   0x3   :  { %68 = vadd.xlane.f32.xlu0 %v67_v3  ;;  %74 = vadd.xlane.f32.xlu1 %v73_v4  ;;  %v76_v9 = vsel %vm66_vm0, %v2700_v5, 0.0  ;;  %v2721_v12 = vld [vmem:[%s4180_s1 + $0x30] sm:$0xff]  ;;  %v2726_v13 = vld [vmem:[%s4180_s1 + $0x38] sm:$0xff]  ;;  %v79_v14 = vsel %vm66_vm0, %v2711_v10, 0.0  ;;  %v82_v15 = vsel %vm66_vm0, %v2716_v11, 0.0  ;;  %v2739_v18 = vld [vmem:[%s4180_s1 + $0x48] sm:$0xff] }
   0x4   :  { %v85_v16 = vsel %vm66_vm0, %v2721_v12, 0.0  ;;  %v88_v17 = vsel %vm66_vm0, %v2726_v13, 0.0  ;;  %v2744_v19 = vld [vmem:[%s4180_s1 + $0x40] sm:$0xff] }
   0x7   :  { %71 = vadd.xlane.f32.xlu0 %v70_v8  ;;  %77 = vadd.xlane.f32.xlu1 %v76_v9 }
   0xb   :  { %80 = vadd.xlane.f32.xlu0 %v79_v14  ;;  %83 = vadd.xlane.f32.xlu1 %v82_v15 }
   0xc   :  { %14 = vsyncpa [#allocation3], 0  ;;  %v94_v20 = vsel %vm66_vm0, %v2739_v18, 0.0  ;;  %v91_v21 = vsel %vm66_vm0, %v2744_v19, 0.0  ;;  %v2753_v22 = vld [vmem:[%s4180_s1 + $0x58] sm:$0xff]  ;;  %v2758_v23 = vld [vmem:[%s4180_s1 + $0x50] sm:$0xff] }
   0xd   :  { %v100_v24 = vsel %vm66_vm0, %v2753_v22, 0.0  ;;  %v97_v25 = vsel %vm66_vm0, %v2758_v23, 0.0  ;;  %v2767_v26 = vld [vmem:[%s4180_s1 + $0x68] sm:$0xff]  ;;  %v2772_v27 = vld [vmem:[%s4180_s1 + $0x60] sm:$0xff]  ;;  %v2781_v30 = vld [vmem:[%s4180_s1 + $0x78] sm:$0xff]  ;;  %v4197_v50 = vmov 2  }
   0xe   :  { %v106_v28 = vsel %vm66_vm0, %v2767_v26, 0.0  ;;  %v103_v29 = vsel %vm66_vm0, %v2772_v27, 0.0  ;;  %v2786_v31 = vld [vmem:[%s4180_s1 + $0x70] sm:$0xff]  ;;  %v112_v32 = vsel %vm66_vm0, %v2781_v30, 0.0  ;;  %v2795_v34 = vld [vmem:[%s4179_s0 + $0x8] sm:$0xff]  ;;  %v2807_v36 = vld [vmem:[%s4179_s0 + $0x18] sm:$0xff] }
   0xf   :  { %86 = vadd.xlane.f32.xlu0 %v85_v16  ;;  %89 = vadd.xlane.f32.xlu1 %v88_v17  ;;  %v109_v33 = vsel %vm66_vm0, %v2786_v31, 0.0  ;;  %v2801_v35 = vld [vmem:[%s4179_s0 + $0x10] sm:$0xff]  ;;  %v2814_v37 = vld [vmem:[%s4179_s0 + $0x20] sm:$0xff]  ;;  %v2821_v38 = vld [vmem:[%s4179_s0 + $0x28] sm:$0xff]  ;;  %v4189_v51 = vmov 3   ;;  %v4195_v52 = vmov 4  }
  0x10   :  { %v2828_v39 = vld [vmem:[%s4179_s0 + $0x30] sm:$0xff]  ;;  %v2833_v40 = vld [vmem:[%s4179_s0] sm:$0xff]  ;;  %v2840_v41 = vld [vmem:[%s4179_s0 + $0x48] sm:$0xff] }
  0x11   :  { %v2846_v42 = vld [vmem:[%s4179_s0 + $0x38] sm:$0xff]  ;;  %v2858_v44 = vld [vmem:[%s4179_s0 + $0x40] sm:$0xff]  ;;  %v2864_v45 = vld [vmem:[%s4179_s0 + $0x68] sm:$0xff] }
  0x12   :  { %v2852_v43 = vld [vmem:[%s4179_s0 + $0x58] sm:$0xff]  ;;  %v2870_v46 = vld [vmem:[%s4179_s0 + $0x50] sm:$0xff]  ;;  %v46_v48 = vld [vmem:[%s4179_s0 + $0x60] sm:$0xff] }
  0x13   :  { %95 = vadd.xlane.f32.xlu1 %v94_v20  ;;  %92 = vadd.xlane.f32.xlu0 %v91_v21  ;;  %v2876_v47 = vld [vmem:[%s4179_s0 + $0x78] sm:$0xff]  ;;  %v2886_v49 = vld [vmem:[%s4179_s0 + $0x70] sm:$0xff] }
  0x17   :  { %101 = vadd.xlane.f32.xlu1 %v100_v24  ;;  %98 = vadd.xlane.f32.xlu0 %v97_v25 }
  0x1b   :  { %107 = vadd.xlane.f32.xlu1 %v106_v28  ;;  %104 = vadd.xlane.f32.xlu0 %v103_v29 }
  0x1f   :  { %113 = vadd.xlane.f32.xlu1 %v112_v32  ;;  %110 = vadd.xlane.f32.xlu0 %v109_v33 }
  0x30   :  { %169 = vperm.xlu1 %2369, %v2795_v34  }
  0x34   :  { %172 = vperm.xlu1 %2369, %v2801_v35  }
  0x35   :  { %345 = vperm.xlu0 %2371, %v2795_v34  }
  0x38   :  { %175 = vperm.xlu1 %2369, %v2807_v36  }
  0x39   :  { %348 = vperm.xlu0 %2371, %v2801_v35  }
  0x3c   :  { %178 = vperm.xlu1 %2369, %v2814_v37  }
  0x3d   :  { %351 = vperm.xlu0 %2371, %v2807_v36  }
  0x40   :  { %181 = vperm.xlu1 %2369, %v2821_v38  }
  0x41   :  { %2374 = vset.pattern.permute.xlu0 %v2617_v6 }
  0x42   :  { %166 = vperm.xlu0 %2374, %v2833_v40  }
  0x44   :  { %184 = vperm.xlu1 %2369, %v2828_v39  }
  0x46   :  { %193 = vperm.xlu0 %2374, %v2840_v41  }
  0x48   :  { %187 = vperm.xlu1 %2369, %v2846_v42  }
  0x4a   :  { %199 = vperm.xlu0 %2374, %v2852_v43  }
  0x4c   :  { %190 = vperm.xlu1 %2369, %v2858_v44  }
  0x4e   :  { %205 = vperm.xlu0 %2374, %v2864_v45  }
  0x50   :  { %196 = vperm.xlu1 %2369, %v2870_v46  }
  0x52   :  { %211 = vperm.xlu0 %2374, %v2876_v47  }
  0x54   :  { %202 = vperm.xlu1 %2369, %v46_v48  }
  0x58   :  { %208 = vperm.xlu1 %2369, %v2886_v49  }
  0x5c   :  { %2370 = vset.pattern.permute.xlu1 %v4201_v7 }
  0x5d   :  { %342 = vperm.xlu1 %2370, %v2833_v40  }
  0x61   :  { %2372 = vset.pattern.permute.xlu1 %v4197_v50 }
  0x62   :  { %505 = vperm.xlu1 %2372, %v2795_v34  }
  0x66   :  { %2373 = vset.pattern.permute.xlu1 %v4189_v51 }
  0x67   :  { %662 = vperm.xlu1 %2373, %v2833_v40  }
  0x6b   :  { %2375 = vset.pattern.permute.xlu1 %v4195_v52 }
  0x6c   :  { %822 = vperm.xlu1 %2375, %v2833_v40  }
  0x70   :  { %2376 = vset.pattern.permute.xlu1 %v2617_v6 }
  0x8c   :  { %v69_v53 = vpop.xlane.xlu0 %68  ;;  %v75_v54 = vpop.xlane.xlu1 %74 }
  0x8d   :  { %v115_v55 = vmax.f32 %v69_v53, 1.0  ;;  %v117_v56 = vmax.f32 %v75_v54, 1.0 }
  0x8f   :  { %2519 = vrcp.f32 %v115_v55 }
  0x90   :  { %2521 = vrcp.f32 %v117_v56  ;;  %v72_v57 = vpop.xlane.xlu0 %71  ;;  %v78_v58 = vpop.xlane.xlu1 %77 }
  0x91   :  { %v116_v59 = vmax.f32 %v72_v57, 1.0  ;;  %v118_v60 = vmax.f32 %v78_v58, 1.0 }
  0x93   :  { %2523 = vrcp.f32 %v116_v59 }
  0x94   :  { %2525 = vrcp.f32 %v118_v60  ;;  %v81_v61 = vpop.xlane.xlu0 %80  ;;  %v84_v62 = vpop.xlane.xlu1 %83 }
  0x95   :  { %v119_v63 = vmax.f32 %v81_v61, 1.0  ;;  %v120_v3 = vmax.f32 %v84_v62, 1.0  ;;  %v4191_v61 = vmov 7  }
  0x97   :  { %2527 = vrcp.f32 %v119_v63 }
  0x98   :  { %2529 = vrcp.f32 %v120_v3  ;;  %v87_v4 = vpop.xlane.xlu0 %86  ;;  %v90_v8 = vpop.xlane.xlu1 %89 }
  0x99   :  { %v121_v9 = vmax.f32 %v87_v4, 1.0  ;;  %v122_v14 = vmax.f32 %v90_v8, 1.0 }
  0x9b   :  { %2531 = vrcp.f32 %v121_v9 }
  0x9c   :  { %v2520_v15 = vpop.eup %2519  ;;  %2533 = vrcp.f32 %v122_v14  ;;  %v93_v29 = vpop.xlane.xlu0 %92 }
  0x9d   :  { %v2522_v16 = vpop.eup %2521  ;;  %v2899_v17 = vmul.f32 %v2520_v15, %v2681_v0  ;;  %v123_v33 = vmax.f32 %v93_v29, 1.0  ;;  %v96_v54 = vpop.xlane.xlu1 %95 }
  0x9e   :  { %v2902_v20 = vmul.f32 %v2522_v16, %v2686_v1  ;;  %v124_v55 = vmax.f32 %v96_v54, 1.0 }
  0x9f   :  { %231 = vperm.xlu1 %2376, %v2899_v17   ;;  %2535 = vrcp.f32 %v123_v33 }
  0xa0   :  { %v2524_v21 = vpop.eup %2523  ;;  %2537 = vrcp.f32 %v124_v55 }
  0xa1   :  { %v2526_v24 = vpop.eup %2525  ;;  %v2906_v25 = vmul.f32 %v2524_v21, %v2691_v2  ;;  %v102_v57 = vpop.xlane.xlu1 %101 }
  0xa2   :  { %v2909_v28 = vmul.f32 %v2526_v24, %v2700_v5 }
  0xa3   :  { %236 = vperm.xlu0 %2374, %v2906_v25   ;;  %241 = vperm.xlu1 %2376, %v2902_v20  }
  0xa4   :  { %v2528_v0 = vpop.eup %2527 }
  0xa5   :  { %v2530_v32 = vpop.eup %2529  ;;  %v2914_v1 = vmul.f32 %v2528_v0, %v2711_v10  ;;  %v99_v10 = vpop.xlane.xlu0 %98 }
  0xa6   :  { %v2917_v48 = vmul.f32 %v2530_v32, %v2716_v11  ;;  %v125_v11 = vmax.f32 %v99_v10, 1.0  ;;  %v108_v58 = vpop.xlane.xlu1 %107 }
  0xa7   :  { %246 = vperm.xlu0 %2374, %v2909_v28   ;;  %251 = vperm.xlu1 %2376, %v2914_v1   ;;  %v128_v62 = vmax.f32 %v108_v58, 1.0  ;;  %v4193_v58 = vmov 5  }
  0xa8   :  { %v2532_v2 = vpop.eup %2531  ;;  %2539 = vrcp.f32 %v125_v11 }
  0xa9   :  { %v2534_v5 = vpop.eup %2533  ;;  %v2922_v53 = vmul.f32 %v2532_v2, %v2721_v12  ;;  %v126_v12 = vmax.f32 %v102_v57, 1.0 }
  0xaa   :  { %v2925_v56 = vmul.f32 %v2534_v5, %v2726_v13  ;;  %v105_v13 = vpop.xlane.xlu0 %104  ;;  %v114_v8 = vpop.xlane.xlu1 %113 }
  0xab   :  { %256 = vperm.xlu0 %2374, %v2917_v48   ;;  %261 = vperm.xlu1 %2376, %v2922_v53   ;;  %2541 = vrcp.f32 %v126_v12  ;;  %v127_v59 = vmax.f32 %v105_v13, 1.0 }
  0xac   :  { %v2536_v60 = vpop.eup %2535 }
  0xad   :  { %v2940_v63 = vmul.f32 %v2536_v60, %v2744_v19  ;;  %2543 = vrcp.f32 %v127_v59  ;;  %v2538_v3 = vpop.eup %2537  ;;  %v130_v19 = vmax.f32 %v114_v8, 1.0 }
  0xae   :  { %v111_v4 = vpop.xlane.xlu0 %110  ;;  %v2945_v9 = vmul.f32 %v2538_v3, %v2739_v18  ;;  %2545 = vrcp.f32 %v128_v62  ;;  %v2949_v16 = vpop.permute.xlu1 %169 }
  0xaf   :  { %266 = vperm.xlu0 %2374, %v2925_v56   ;;  %2377 = vset.pattern.permute.xlu1 %v4201_v7  ;;  %v129_v14 = vmax.f32 %v111_v4, 1.0 }
  0xb0   :  { %406 = vperm.xlu1 %2377, %v2899_v17  }
  0xb1   :  { %2547 = vrcp.f32 %v129_v14 }
  0xb2   :  { %2549 = vrcp.f32 %v130_v19  ;;  %v2962_v29 = vpop.permute.xlu1 %172  ;;  %v3013_v10 = vpop.permute.xlu0 %345 }
  0xb3   :  { %2405 = vset.pattern.permute.xlu0 %v4201_v7  ;;  %4207 = vst [vmem:[#allocation5_spill] sm:$0xff] %v2962_v29 }
  0xb4   :  { %430 = vperm.xlu0 %2405, %v2922_v53   ;;  %410 = vperm.xlu1 %2377, %v2906_v25  }
  0xb5   :  { %v2540_v15 = vpop.eup %2539 }
  0xb6   :  { %v2952_v21 = vmul.f32 %v2540_v15, %v2758_v23  ;;  %v2973_v32 = vpop.permute.xlu1 %175  ;;  %v3021_v57 = vpop.permute.xlu0 %348 }
  0xb7   :  { %4216 = vst [vmem:[#allocation14_spill] sm:$0xff] %v3021_v57 }
  0xb8   :  { %2408 = vset.pattern.permute.xlu0 %v4191_v61  ;;  %2378 = vset.pattern.permute.xlu1 %v4197_v50  ;;  %v4199_v61 = vmov 6  }
  0xb9   :  { %1366 = vperm.xlu0 %2408, %v2899_v17   ;;  %566 = vperm.xlu1 %2378, %v2899_v17  }
  0xba   :  { %v2982_v5 = vpop.permute.xlu1 %178  ;;  %v3028_v13 = vpop.permute.xlu0 %351 }
  0xbb   :  { %4210 = vst [vmem:[#allocation8_spill] sm:$0xff] %v2982_v5 }
  0xbd   :  { %2423 = vset.pattern.permute.xlu0 %v2617_v6  ;;  %570 = vperm.xlu1 %2378, %v2906_v25   ;;  %v2542_v6 = vpop.eup %2541 }
  0xbe   :  { %271 = vperm.xlu0 %2423, %v2940_v63   ;;  %v2957_v18 = vmul.f32 %v2542_v6, %v2753_v22  ;;  %v2544_v24 = vpop.eup %2543  ;;  %v2990_v54 = vpop.permute.xlu1 %181 }
  0xbf   :  { %v2965_v23 = vmul.f32 %v2544_v24, %v2772_v27  ;;  %v2546_v0 = vpop.eup %2545  ;;  %4211 = vst [vmem:[#allocation9_spill] sm:$0xff] %v2990_v54  ;;  %v3036_v60 = vpop.permute.xlu0 %166  ;;  %v4240_v54 = vmov 3  }
  0xc0   :  { %v2971_v22 = vmul.f32 %v2546_v0, %v2767_v26  ;;  %v2548_v33 = vpop.eup %2547 }
  0xc1   :  { %2379 = vset.pattern.permute.xlu1 %v4201_v7  ;;  %4208 = vst [vmem:[#allocation6_spill] sm:$0xff] %v2965_v23  ;;  %v2979_v27 = vmul.f32 %v2548_v33, %v2786_v31  ;;  %v2550_v2 = vpop.eup %2549 }
  0xc2   :  { %276 = vperm.xlu0 %2423, %v2945_v9   ;;  %414 = vperm.xlu1 %2379, %v2902_v20   ;;  %4209 = vst [vmem:[#allocation7_spill] sm:$0xff] %v2971_v22  ;;  %v2986_v26 = vmul.f32 %v2550_v2, %v2781_v30  ;;  %v2998_v30 = vpop.permute.xlu1 %184 }
  0xc3   :  { %4212 = vst [vmem:[#allocation10_spill] sm:$0xff] %v2998_v30  ;;  %v3044_v3 = vpop.permute.xlu0 %193 }
  0xc4   :  { %4219 = vst [vmem:[#allocation17_spill] sm:$0xff] %v3044_v3 }
  0xc6   :  { %281 = vperm.xlu0 %2423, %v2952_v21   ;;  %2380 = vset.pattern.permute.xlu1 %v4189_v51  ;;  %v3004_v31 = vpop.permute.xlu1 %187 }
  0xc7   :  { %726 = vperm.xlu1 %2380, %v2899_v17   ;;  %4213 = vst [vmem:[#allocation11_spill] sm:$0xff] %v3004_v31  ;;  %v3053_v8 = vpop.permute.xlu0 %199 }
  0xc8   :  { %4220 = vst [vmem:[#allocation18_spill] sm:$0xff] %v3053_v8  ;;  %v4232_v8 = vmov 5  }
  0xca   :  { %286 = vperm.xlu0 %2423, %v2957_v18   ;;  %v3010_v55 = vpop.permute.xlu1 %190 }
  0xcb   :  { %2381 = vset.pattern.permute.xlu1 %v4201_v7  ;;  %4214 = vst [vmem:[#allocation12_spill] sm:$0xff] %v3010_v55  ;;  %v3060_v15 = vpop.permute.xlu0 %205 }
  0xcc   :  { %418 = vperm.xlu1 %2381, %v2909_v28   ;;  %4221 = vst [vmem:[#allocation19_spill] sm:$0xff] %v3060_v15 }
  0xce   :  { %291 = vperm.xlu0 %2423, %v2965_v23   ;;  %v3017_v11 = vpop.permute.xlu1 %196 }
  0xcf   :  { %4215 = vst [vmem:[#allocation13_spill] sm:$0xff] %v3017_v11  ;;  %v3069_v6 = vpop.permute.xlu0 %211 }
  0xd0   :  { %2382 = vset.pattern.permute.xlu1 %v4189_v51  ;;  %4222 = vst [vmem:[#allocation20_spill] sm:$0xff] %v3069_v6 }
  0xd1   :  { %730 = vperm.xlu1 %2382, %v2906_v25  }
  0xd2   :  { %296 = vperm.xlu0 %2423, %v2971_v22   ;;  %v3025_v12 = vpop.permute.xlu1 %202 }
  0xd3   :  { %4217 = vst [vmem:[#allocation15_spill] sm:$0xff] %v3025_v12 }
  0xd5   :  { %2383 = vset.pattern.permute.xlu1 %v4197_v50 }
  0xd6   :  { %301 = vperm.xlu0 %2423, %v2979_v27   ;;  %574 = vperm.xlu1 %2383, %v2902_v20   ;;  %v3033_v59 = vpop.permute.xlu1 %208 }
  0xd7   :  { %4218 = vst [vmem:[#allocation16_spill] sm:$0xff] %v3033_v59  ;;  %v4230_v59 = vmov 4  }
  0xda   :  { %306 = vperm.xlu0 %2423, %v2986_v26   ;;  %2384 = vset.pattern.permute.xlu1 %v4195_v52  ;;  %v3040_v62 = vpop.permute.xlu1 %342 }
  0xdb   :  { %886 = vperm.xlu1 %2384, %v2899_v17  }
  0xde   :  { %2478 = vset.pattern.permute.xlu0 %v4197_v50  ;;  %v3048_v4 = vpop.permute.xlu1 %505 }
  0xdf   :  { %502 = vperm.xlu0 %2478, %v2833_v40   ;;  %2385 = vset.pattern.permute.xlu1 %v4201_v7 }
  0xe0   :  { %354 = vperm.xlu1 %2385, %v2814_v37  }
  0xe2   :  { %v3055_v14 = vpop.permute.xlu1 %662 }
  0xe3   :  { %508 = vperm.xlu0 %2478, %v2801_v35  }
  0xe4   :  { %2386 = vset.pattern.permute.xlu1 %v4189_v51 }
  0xe5   :  { %668 = vperm.xlu1 %2386, %v2801_v35  }
  0xe7   :  { %511 = vperm.xlu0 %2478, %v2807_v36   ;;  %v3064_v19 = vpop.permute.xlu1 %822 }
  0xe9   :  { %2387 = vset.pattern.permute.xlu1 %v4195_v52 }
  0xea   :  { %890 = vperm.xlu1 %2387, %v2906_v25  }
  0xeb   :  { %578 = vperm.xlu0 %2478, %v2909_v28  }
  0xee   :  { %2388 = vset.pattern.permute.xlu1 %v4201_v7 }
  0xef   :  { %590 = vperm.xlu0 %2478, %v2922_v53   ;;  %357 = vperm.xlu1 %2388, %v2821_v38  }
  0xf3   :  { %594 = vperm.xlu0 %2478, %v2925_v56   ;;  %422 = vperm.xlu1 %2388, %v2914_v1  }
  0xf7   :  { %598 = vperm.xlu0 %2478, %v2940_v63   ;;  %2389 = vset.pattern.permute.xlu1 %v4189_v51 }
  0xf8   :  { %734 = vperm.xlu1 %2389, %v2902_v20  }
  0xfb   :  { %602 = vperm.xlu0 %2478, %v2945_v9  }
  0xfc   :  { %2390 = vset.pattern.permute.xlu1 %v4193_v58 }
  0xfd   :  { %985 = vperm.xlu1 %2390, %v2795_v34  }
  0xff   :  { %606 = vperm.xlu0 %2478, %v2952_v21  }
 0x101   :  { %2391 = vset.pattern.permute.xlu1 %v4201_v7 }
 0x102   :  { %426 = vperm.xlu1 %2391, %v2917_v48  }
 0x103   :  { %610 = vperm.xlu0 %2478, %v2957_v18  }
 0x106   :  { %2392 = vset.pattern.permute.xlu1 %v4197_v50 }
 0x107   :  { %614 = vperm.xlu0 %2478, %v2965_v23   ;;  %514 = vperm.xlu1 %2392, %v2814_v37  }
 0x10b   :  { %618 = vperm.xlu0 %2478, %v2971_v22   ;;  %2393 = vset.pattern.permute.xlu1 %v4195_v52 }
 0x10c   :  { %828 = vperm.xlu1 %2393, %v2801_v35  }
 0x10f   :  { %622 = vperm.xlu0 %2478, %v2979_v27  }
 0x110   :  { %2394 = vset.pattern.permute.xlu1 %v4193_v58 }
 0x111   :  { %1050 = vperm.xlu1 %2394, %v2906_v25  }
 0x113   :  { %2485 = vset.pattern.permute.xlu0 %v4189_v51 }
 0x114   :  { %665 = vperm.xlu0 %2485, %v2795_v34  }
 0x115   :  { %2395 = vset.pattern.permute.xlu1 %v4197_v50 }
 0x116   :  { %517 = vperm.xlu1 %2395, %v2821_v38  }
 0x118   :  { %671 = vperm.xlu0 %2485, %v2807_v36  }
 0x11a   :  { %582 = vperm.xlu1 %2395, %v2914_v1   ;;  %v3072_v24 = vpop.permute.xlu1 %231 }
 0x11c   :  { %738 = vperm.xlu0 %2485, %v2909_v28  }
 0x11e   :  { %v3075_v0 = vpop.permute.xlu0 %236  ;;  %2396 = vset.pattern.permute.xlu1 %v4195_v52  ;;  %v3078_v33 = vpop.permute.xlu1 %241 }
 0x11f   :  { %4223 = vst [vmem:[#allocation21_spill] sm:$0xff] %v3078_v33  ;;  %894 = vperm.xlu1 %2396, %v2902_v20  }
 0x120   :  { %674 = vperm.xlu0 %2485, %v2814_v37  }
 0x122   :  { %v3082_v2 = vpop.permute.xlu0 %246  ;;  %v3084_v51 = vpop.permute.xlu1 %251 }
 0x123   :  { %4224 = vst [vmem:[#allocation22_spill] sm:$0xff] %v3084_v51  ;;  %2397 = vset.pattern.permute.xlu1 %v4199_v61  ;;  %v4228_v61 = vmov 2  }
 0x124   :  { %746 = vperm.xlu0 %2485, %v2917_v48   ;;  %1145 = vperm.xlu1 %2397, %v2795_v34  }
 0x126   :  { %v3089_v58 = vpop.permute.xlu0 %256  ;;  %v3091_v52 = vpop.permute.xlu1 %261 }
 0x127   :  { %4225 = vst [vmem:[#allocation23_spill] sm:$0xff] %v3089_v58  ;;  %4226 = vst [vmem:[#allocation24_spill] sm:$0xff] %v3091_v52 }
 0x128   :  { %683 = vperm.xlu0 %2485, %v2846_v42   ;;  %2398 = vset.pattern.permute.xlu1 %v4201_v7 }
 0x129   :  { %360 = vperm.xlu1 %2398, %v2828_v39  }
 0x12a   :  { %v3096_v50 = vpop.permute.xlu0 %266 }
 0x12b   :  { %4227 = vst [vmem:[#allocation25_spill] sm:$0xff] %v3096_v50  ;;  %v3098_v6 = vpop.permute.xlu1 %406  ;;  %v4234_v50 = vmov 7  }
 0x12c   :  { %754 = vperm.xlu0 %2485, %v2925_v56  }
 0x12d   :  { %2399 = vset.pattern.permute.xlu1 %v4228_v61 }
 0x12e   :  { %586 = vperm.xlu1 %2399, %v2917_v48  }
 0x12f   :  { %v3103_v12 = vpop.permute.xlu0 %430  ;;  %v3105_v3 = vpop.permute.xlu1 %410 }
 0x130   :  { %4229 = vst [vmem:[#allocation26_spill] sm:$0xff] %v3103_v12  ;;  %689 = vperm.xlu0 %2485, %v2840_v41   ;;  %v4238_v12 = vmov 1  }
 0x132   :  { %2400 = vset.pattern.permute.xlu1 %v4230_v59 }
 0x133   :  { %898 = vperm.xlu1 %2400, %v2909_v28  }
 0x134   :  { %762 = vperm.xlu0 %2485, %v2945_v9   ;;  %v3111_v7 = vpop.permute.xlu0 %1366  ;;  %v3113_v55 = vpop.permute.xlu1 %566 }
 0x135   :  { %4231 = vst [vmem:[#allocation27_spill] sm:$0xff] %v3111_v7 }
 0x137   :  { %2401 = vset.pattern.permute.xlu1 %v4232_v8 }
 0x138   :  { %695 = vperm.xlu0 %2485, %v2852_v43   ;;  %988 = vperm.xlu1 %2401, %v2801_v35   ;;  %v3118_v11 = vpop.permute.xlu1 %570 }
 0x139   :  { %v3120_v15 = vpop.permute.xlu0 %271 }
 0x13a   :  { %4233 = vst [vmem:[#allocation28_spill] sm:$0xff] %v3120_v15 }
 0x13c   :  { %770 = vperm.xlu0 %2485, %v2957_v18   ;;  %2402 = vset.pattern.permute.xlu1 %v4234_v50 }
 0x13d   :  { %v3124_v31 = vpop.permute.xlu0 %276  ;;  %1302 = vperm.xlu1 %2402, %v2833_v40   ;;  %v3127_v52 = vpop.permute.xlu1 %414 }
 0x13e   :  { %4235 = vst [vmem:[#allocation29_spill] sm:$0xff] %v3124_v31  ;;  %4236 = vst [vmem:[#allocation30_spill] sm:$0xff] %v3127_v52 }
 0x140   :  { %701 = vperm.xlu0 %2485, %v2864_v45  }
 0x141   :  { %v3130_v30 = vpop.permute.xlu0 %281  ;;  %2403 = vset.pattern.permute.xlu1 %v4238_v12 }
 0x142   :  { %4237 = vst [vmem:[#allocation31_spill] sm:$0xff] %v3130_v30  ;;  %363 = vperm.xlu1 %2403, %v2846_v42   ;;  %v3134_v58 = vpop.permute.xlu1 %726 }
 0x144   :  { %778 = vperm.xlu0 %2485, %v2971_v22  }
 0x145   :  { %v3137_v15 = vpop.permute.xlu0 %286 }
 0x146   :  { %4239 = vst [vmem:[#allocation32_spill] sm:$0xff] %v3137_v15  ;;  %2404 = vset.pattern.permute.xlu1 %v4240_v54 }
 0x147   :  { %677 = vperm.xlu1 %2404, %v2821_v38   ;;  %v3141_v31 = vpop.permute.xlu1 %418 }
 0x148   :  { %704 = vperm.xlu0 %2485, %v2886_v49  }
 0x149   :  { %v3144_v51 = vpop.permute.xlu0 %291 }
 0x14a   :  { %4241 = vst [vmem:[#allocation33_spill] sm:$0xff] %v3144_v51 }
 0x14b   :  { %742 = vperm.xlu1 %2404, %v2914_v1  }
 0x14c   :  { %782 = vperm.xlu0 %2485, %v2979_v27   ;;  %v3148_v30 = vpop.permute.xlu1 %730 }
 0x14d   :  { %v3150_v5 = vpop.permute.xlu0 %296 }
 0x14e   :  { %4242 = vst [vmem:[#allocation34_spill] sm:$0xff] %v3150_v5 }
 0x14f   :  { %2406 = vset.pattern.permute.xlu1 %v4232_v8 }
 0x150   :  { %2493 = vset.pattern.permute.xlu0 %v4230_v59  ;;  %1054 = vperm.xlu1 %2406, %v2902_v20  }
 0x151   :  { %825 = vperm.xlu0 %2493, %v2795_v34   ;;  %v3156_v15 = vpop.permute.xlu0 %301  ;;  %v3158_v22 = vpop.permute.xlu1 %574 }
 0x152   :  { %4243 = vst [vmem:[#allocation35_spill] sm:$0xff] %v3156_v15  ;;  %4244 = vst [vmem:[#allocation36_spill] sm:$0xff] %v3158_v22 }
 0x154   :  { %2407 = vset.pattern.permute.xlu1 %v4234_v50 }
 0x155   :  { %831 = vperm.xlu0 %2493, %v2807_v36   ;;  %1305 = vperm.xlu1 %2407, %v2795_v34   ;;  %v3163_v51 = vpop.permute.xlu0 %306 }
 0x156   :  { %4245 = vst [vmem:[#allocation37_spill] sm:$0xff] %v3163_v51  ;;  %v3165_v5 = vpop.permute.xlu1 %886 }
 0x157   :  { %4246 = vst [vmem:[#allocation38_spill] sm:$0xff] %v3165_v5 }
 0x159   :  { %864 = vperm.xlu0 %2493, %v2886_v49   ;;  %2409 = vset.pattern.permute.xlu1 %v4238_v12 }
 0x15a   :  { %v3169_v23 = vpop.permute.xlu0 %502  ;;  %434 = vperm.xlu1 %2409, %v2925_v56  }
 0x15b   :  { %v3172_v15 = vpop.permute.xlu1 %354 }
 0x15c   :  { %4247 = vst [vmem:[#allocation39_spill] sm:$0xff] %v3172_v15 }
 0x15d   :  { %2497 = vset.pattern.permute.xlu0 %v4232_v8 }
 0x15e   :  { %982 = vperm.xlu0 %2497, %v2833_v40   ;;  %v3176_v22 = vpop.permute.xlu0 %508  ;;  %2410 = vset.pattern.permute.xlu1 %v4228_v61 }
 0x15f   :  { %4248 = vst [vmem:[#allocation40_spill] sm:$0xff] %v3176_v22  ;;  %520 = vperm.xlu1 %2410, %v2828_v39  }
 0x160   :  { %v3180_v34 = vpop.permute.xlu1 %668 }
 0x161   :  { %4249 = vst [vmem:[#allocation41_spill] sm:$0xff] %v3180_v34 }
 0x162   :  { %1046 = vperm.xlu0 %2497, %v2899_v17   ;;  %v3183_v51 = vpop.permute.xlu0 %511 }
 0x163   :  { %2411 = vset.pattern.permute.xlu1 %v4230_v59 }
 0x164   :  { %834 = vperm.xlu1 %2411, %v2814_v37  }
 0x165   :  { %v3187_v15 = vpop.permute.xlu1 %890 }
 0x166   :  { %4250 = vst [vmem:[#allocation42_spill] sm:$0xff] %v3187_v15  ;;  %991 = vperm.xlu0 %2497, %v2807_v36   ;;  %v3190_v33 = vpop.permute.xlu0 %578 }
 0x168   :  { %2412 = vset.pattern.permute.xlu1 %v4232_v8 }
 0x169   :  { %1058 = vperm.xlu1 %2412, %v2909_v28  }
 0x16a   :  { %994 = vperm.xlu0 %2497, %v2814_v37   ;;  %v3195_v34 = vpop.permute.xlu0 %590  ;;  %v3197_v29 = vpop.permute.xlu1 %357 }
 0x16b   :  { %4251 = vst [vmem:[#allocation43_spill] sm:$0xff] %v3195_v34  ;;  %4252 = vst [vmem:[#allocation44_spill] sm:$0xff] %v3197_v29 }
 0x16d   :  { %2413 = vset.pattern.permute.xlu1 %v4234_v50 }
 0x16e   :  { %1062 = vperm.xlu0 %2497, %v2914_v1   ;;  %v3201_v52 = vpop.permute.xlu0 %594  ;;  %1370 = vperm.xlu1 %2413, %v2906_v25   ;;  %v3204_v22 = vpop.permute.xlu1 %422 }
 0x16f   :  { %4253 = vst [vmem:[#allocation45_spill] sm:$0xff] %v3201_v52  ;;  %4254 = vst [vmem:[#allocation46_spill] sm:$0xff] %v3204_v22 }
 0x172   :  { %1000 = vperm.xlu0 %2497, %v2828_v39   ;;  %v3207_v57 = vpop.permute.xlu0 %598  ;;  %2414 = vset.pattern.permute.xlu1 %v4228_v61 }
 0x173   :  { %4255 = vst [vmem:[#allocation47_spill] sm:$0xff] %v3207_v57  ;;  %523 = vperm.xlu1 %2414, %v2846_v42   ;;  %v3211_v34 = vpop.permute.xlu1 %734  ;;  %v1476_v57 = vld [vmem:[%s4181_s2 + $0x78] sm:$0xff] }
 0x174   :  { %4256 = vst [vmem:[#allocation48_spill] sm:$0xff] %v3211_v34  ;;  %2238 = vmatprep.subr.mxu0 %v1476_v57 }
 0x175   :  { %2239 = vmatpush3.msra.mxu0 %v1476_v57  ;;  %v1473_v57 = vld [vmem:[%s4181_s2 + $0x60] sm:$0xff] }
 0x176   :  { %1070 = vperm.xlu0 %2497, %v2922_v53   ;;  %v3214_v29 = vpop.permute.xlu0 %602 }
 0x177   :  { %4257 = vst [vmem:[#allocation49_spill] sm:$0xff] %v3214_v29  ;;  %2415 = vset.pattern.permute.xlu1 %v4230_v59  ;;  %v1475_v29 = vld [vmem:[%s4181_s2 + $0x70] sm:$0xff] }
 0x178   :  { %837 = vperm.xlu1 %2415, %v2821_v38   ;;  %v3218_v52 = vpop.permute.xlu1 %985  ;;  %2240 = vmatprep.subr.mxu0 %v1475_v29 }
 0x179   :  { %4258 = vst [vmem:[#allocation50_spill] sm:$0xff] %v3218_v52  ;;  %2241 = vmatpush3.msra.mxu0 %v1475_v29  ;;  %v4262_v52 = vmov 6   ;;  %v1472_v29 = vld [vmem:[%s4181_s2 + $0x58] sm:$0xff] }
 0x17a   :  { %1006 = vperm.xlu0 %2497, %v2858_v44   ;;  %v3221_v22 = vpop.permute.xlu0 %606 }
 0x17b   :  { %4259 = vst [vmem:[#allocation51_spill] sm:$0xff] %v3221_v22  ;;  %v1474_v22 = vld [vmem:[%s4181_s2 + $0x68] sm:$0xff] }
 0x17c   :  { %902 = vperm.xlu1 %2415, %v2914_v1   ;;  %2242 = vmatprep.subr.mxu0 %v1474_v22 }
 0x17d   :  { %v3230_v34 = vpop.permute.xlu1 %426  ;;  %2243 = vmatpush3.msra.mxu0 %v1474_v22  ;;  %v1471_v22 = vld [vmem:[%s4181_s2 + $0x50] sm:$0xff] }
 0x17e   :  { %4260 = vst [vmem:[#allocation52_spill] sm:$0xff] %v3230_v34  ;;  %1078 = vperm.xlu0 %2497, %v2940_v63   ;;  %v3233_v7 = vpop.permute.xlu0 %610  ;;  %2244 = vmatprep.subr.mxu0 %v1473_v57 }
 0x17f   :  { %4261 = vst [vmem:[#allocation53_spill] sm:$0xff] %v3233_v7  ;;  %2245 = vmatpush3.msra.mxu0 %v1473_v57  ;;  %v1470_v57 = vld [vmem:[%s4181_s2 + $0x48] sm:$0xff] }
 0x180   :  { %2416 = vset.pattern.permute.xlu1 %v4262_v52  ;;  %2246 = vmatprep.subr.mxu0 %v1472_v29 }
 0x181   :  { %1214 = vperm.xlu1 %2416, %v2902_v20   ;;  %2247 = vmatpush3.msra.mxu0 %v1472_v29 }
 0x182   :  { %1012 = vperm.xlu0 %2497, %v2870_v46   ;;  %v3244_v34 = vpop.permute.xlu0 %614  ;;  %v3246_v7 = vpop.permute.xlu1 %514  ;;  %2248 = vmatprep.subr.mxu0 %v1471_v22 }
 0x183   :  { %4263 = vst [vmem:[#allocation54_spill] sm:$0xff] %v3244_v34  ;;  %4264 = vst [vmem:[#allocation55_spill] sm:$0xff] %v3246_v7  ;;  %2249 = vmatpush3.msra.mxu0 %v1471_v22  ;;  %v1469_v7 = vld [vmem:[%s4181_s2 + $0x40] sm:$0xff]  ;;  %v1467_v22 = vld [vmem:[%s4181_s2 + $0x30] sm:$0xff] }
 0x184   :  { %2250 = vmatprep.subr.mxu0 %v1470_v57 }
 0x185   :  { %2417 = vset.pattern.permute.xlu1 %v4238_v12  ;;  %2251 = vmatpush3.msra.mxu0 %v1470_v57  ;;  %v1466_v57 = vld [vmem:[%s4181_s2 + $0x28] sm:$0xff] }
 0x186   :  { %1086 = vperm.xlu0 %2497, %v2952_v21   ;;  %v3256_v15 = vpop.permute.xlu0 %618  ;;  %366 = vperm.xlu1 %2417, %v2858_v44  }
 0x187   :  { %4265 = vst [vmem:[#allocation56_spill] sm:$0xff] %v3256_v15  ;;  %v3259_v34 = vpop.permute.xlu1 %828  ;;  %v1468_v15 = vld [vmem:[%s4181_s2 + $0x38] sm:$0xff]  ;;  %2252 = vmatprep.subr.mxu0 %v1469_v7 }
 0x188   :  { %4266 = vst [vmem:[#allocation57_spill] sm:$0xff] %v3259_v34  ;;  %2253 = vmatpush3.msra.mxu0 %v1469_v7 }
 0x189   :  { %2254 = vmatprep.subr.mxu0 %v1468_v15 }
 0x18a   :  { %1024 = vperm.xlu0 %2497, %v2886_v49   ;;  %2418 = vset.pattern.permute.xlu1 %v4240_v54  ;;  %v3269_v29 = vpop.permute.xlu0 %622 }
 0x18b   :  { %4267 = vst [vmem:[#allocation58_spill] sm:$0xff] %v3269_v29  ;;  %680 = vperm.xlu1 %2418, %v2828_v39   ;;  %2255 = vmatpush3.msra.mxu0 %v1468_v15  ;;  %v1464_v29 = vld [vmem:[%s4181_s2 + $0x18] sm:$0xff] }
 0x18c   :  { %v3275_v34 = vpop.permute.xlu1 %1050  ;;  %2256 = vmatprep.subr.mxu0 %v1467_v22 }
 0x18d   :  { %4268 = vst [vmem:[#allocation59_spill] sm:$0xff] %v3275_v34  ;;  %2257 = vmatpush3.msra.mxu0 %v1467_v22 }
 0x18e   :  { %1027 = vperm.xlu0 %2497, %v2876_v47   ;;  %v1465_v47 = vld [vmem:[%s4181_s2 + $0x20] sm:$0xff]  ;;  %2258 = vmatprep.subr.mxu0 %v1466_v57 }
 0x18f   :  { %v3281_v5 = vpop.permute.xlu0 %665  ;;  %2419 = vset.pattern.permute.xlu1 %v4230_v59  ;;  %2259 = vmatpush3.msra.mxu0 %v1466_v57  ;;  %v1462_v57 = vld [vmem:[%s4181_s2 + $0x8] sm:$0xff] }
 0x190   :  { %906 = vperm.xlu1 %2419, %v2917_v48   ;;  %2260 = vmatprep.subr.mxu0 %v1465_v47 }
 0x191   :  { %v3288_v7 = vpop.permute.xlu1 %517  ;;  %2261 = vmatpush3.msra.mxu0 %v1465_v47  ;;  %v1461_v47 = vld [vmem:[%s4181_s2] sm:$0xff] }
 0x192   :  { %4269 = vst [vmem:[#allocation60_spill] sm:$0xff] %v3288_v7  ;;  %2505 = vset.pattern.permute.xlu0 %v4262_v52  ;;  %v1463_v7 = vld [vmem:[%s4181_s2 + $0x10] sm:$0xff]  ;;  %2262 = vmatprep.subr.mxu0 %v1464_v29 }
 0x193   :  { %1142 = vperm.xlu0 %2505, %v2833_v40   ;;  %v3295_v15 = vpop.permute.xlu0 %671  ;;  %2263 = vmatpush3.msra.mxu0 %v1464_v29  ;;  %v163_v29 = vlaneseq }
 0x194   :  { %2420 = vset.pattern.permute.xlu1 %v4262_v52  ;;  %2264 = vmatprep.subr.mxu0 %v1463_v7 }
 0x195   :  { %1218 = vperm.xlu1 %2420, %v2909_v28   ;;  %v3302_v22 = vpop.permute.xlu1 %582  ;;  %2265 = vmatpush3.msra.mxu0 %v1463_v7 }
 0x196   :  { %4270 = vst [vmem:[#allocation61_spill] sm:$0xff] %v3302_v22  ;;  %2266 = vmatprep.subr.mxu0 %v1462_v57 }
 0x197   :  { %1206 = vperm.xlu0 %2505, %v2899_v17   ;;  %v3308_v40 = vpop.permute.xlu0 %738  ;;  %2267 = vmatpush3.msra.mxu0 %v1462_v57 }
 0x198   :  { %2268 = vmatprep.subr.mxu0 %v1461_v47 }
 0x199   :  { %2421 = vset.pattern.permute.xlu1 %v4234_v50  ;;  %2269 = vmatpush3.msra.mxu0 %v1461_v47 }
 0x19a   :  { %1308 = vperm.xlu1 %2421, %v2801_v35   ;;  %v3318_v22 = vpop.permute.xlu1 %894 }
 0x19b   :  { %4271 = vst [vmem:[#allocation62_spill] sm:$0xff] %v3318_v22  ;;  %1210 = vperm.xlu0 %2505, %v2906_v25   ;;  %v3321_v17 = vpop.permute.xlu0 %674  ;;  %v3330_v22 = vand.u32 127, %v163_v29 }
 0x19d   :  { %vm392_vm6 = vcmp.eq.s32.totalorder %v3028_v13, %v3330_v22  ;;  %vm552_vm7 = vcmp.eq.s32.totalorder %v3183_v51, %v3330_v22  ;;  %vm216_vm8 = vcmp.eq.s32.totalorder %v2973_v32, %v3330_v22  ;;  %vm712_vm9 = vcmp.eq.s32.totalorder %v3295_v15, %v3330_v22 }
 0x19e   :  { %2422 = vset.pattern.permute.xlu1 %v4238_v12  ;;  %v632_v13 = vsel %vm552_vm7, %v3190_v33, 0.0  ;;  %vm389_vm0 = vcmp.eq.s32.totalorder %v3040_v62, %v3330_v22  ;;  %vm710_vm7 = vcmp.eq.s32.totalorder %v3281_v5, %v3330_v22 }
 0x19f   :  { %1148 = vperm.xlu0 %2505, %v2801_v35   ;;  %v3325_v7 = vpop.permute.xlu0 %746  ;;  %369 = vperm.xlu1 %2422, %v2840_v41   ;;  %v3328_v34 = vpop.permute.xlu1 %1145 }
 0x1a0   :  { %4272 = vst [vmem:[#allocation63_spill] sm:$0xff] %v3325_v7 }
 0x1a3   :  { %1151 = vperm.xlu0 %2505, %v2807_v36   ;;  %v684_v25 = vpop.permute.xlu0 %683  ;;  %438 = vperm.xlu1 %2422, %v2940_v63  }
 0x1a4   :  { %v3334_v57 = vpop.permute.xlu1 %360  ;;  %vm716_vm1 = vcmp.eq.s32.totalorder %v684_v25, %v3330_v22 }
 0x1a5   :  { %4273 = vst [vmem:[#allocation64_spill] sm:$0xff] %v3334_v57 }
 0x1a7   :  { %1154 = vperm.xlu0 %2505, %v2814_v37   ;;  %v755_v35 = vpop.permute.xlu0 %754  ;;  %2424 = vset.pattern.permute.xlu1 %v4240_v54 }
 0x1a8   :  { %v3339_v47 = vsel %vm716_vm1, %v755_v35, 0.0  ;;  %750 = vperm.xlu1 %2424, %v2922_v53   ;;  %vm213_vm1 = vcmp.eq.s32.totalorder %v3036_v60, %v3330_v22 }
 0x1a9   :  { %4274 = vst [vmem:[#allocation65_spill] sm:$0xff] %v3339_v47  ;;  %v3342_v29 = vpop.permute.xlu1 %586 }
 0x1ab   :  { %1157 = vperm.xlu0 %2505, %v2821_v38   ;;  %v690_v7 = vpop.permute.xlu0 %689 }
 0x1ac   :  { %2425 = vset.pattern.permute.xlu1 %v4232_v8  ;;  %vm718_vm2 = vcmp.eq.s32.totalorder %v690_v7, %v3330_v22 }
 0x1ad   :  { %997 = vperm.xlu1 %2425, %v2821_v38  }
 0x1ae   :  { %v3348_v25 = vpop.permute.xlu1 %898 }
 0x1af   :  { %1160 = vperm.xlu0 %2505, %v2828_v39   ;;  %v763_v37 = vpop.permute.xlu0 %762 }
 0x1b0   :  { %v3351_v35 = vsel %vm718_vm2, %v763_v37, 0.0  ;;  %vm549_vm2 = vcmp.eq.s32.totalorder %v3169_v23, %v3330_v22 }
 0x1b1   :  { %4275 = vst [vmem:[#allocation66_spill] sm:$0xff] %v3351_v35  ;;  %2426 = vset.pattern.permute.xlu1 %v4234_v50 }
 0x1b2   :  { %1311 = vperm.xlu1 %2426, %v2807_v36  }
 0x1b3   :  { %1163 = vperm.xlu0 %2505, %v2846_v42   ;;  %v696_v47 = vpop.permute.xlu0 %695  ;;  %v3356_v57 = vpop.permute.xlu1 %988 }
 0x1b4   :  { %vm720_vm3 = vcmp.eq.s32.totalorder %v696_v47, %v3330_v22 }
 0x1b6   :  { %1374 = vperm.xlu1 %2426, %v2902_v20  }
 0x1b7   :  { %1166 = vperm.xlu0 %2505, %v2858_v44   ;;  %v771_v38 = vpop.permute.xlu0 %770 }
 0x1b8   :  { %v3361_v7 = vsel %vm720_vm3, %v771_v38, 0.0  ;;  %v3363_v37 = vpop.permute.xlu1 %1302  ;;  %vm390_vm3 = vcmp.eq.s32.totalorder %v3013_v10, %v3330_v22 }
 0x1b9   :  { %4276 = vst [vmem:[#allocation67_spill] sm:$0xff] %v3361_v7  ;;  %v470_v23 = vsel %vm390_vm3, %v3105_v3, 0.0 }
 0x1ba   :  { %2427 = vset.pattern.permute.xlu1 %v4238_v12 }
 0x1bb   :  { %1169 = vperm.xlu0 %2505, %v2840_v41   ;;  %v702_v36 = vpop.permute.xlu0 %701  ;;  %442 = vperm.xlu1 %2427, %v2945_v9  }
 0x1bc   :  { %vm722_vm4 = vcmp.eq.s32.totalorder %v702_v36, %v3330_v22 }
 0x1bd   :  { %v3369_v35 = vpop.permute.xlu1 %363 }
 0x1be   :  { %4277 = vst [vmem:[#allocation68_spill] sm:$0xff] %v3369_v35 }
 0x1bf   :  { %1172 = vperm.xlu0 %2505, %v2870_v46   ;;  %v779_v20 = vpop.permute.xlu0 %778  ;;  %2428 = vset.pattern.permute.xlu1 %v4228_v61 }
 0x1c0   :  { %v3373_v47 = vsel %vm722_vm4, %v779_v20, 0.0  ;;  %526 = vperm.xlu1 %2428, %v2858_v44   ;;  %vm214_vm4 = vcmp.eq.s32.totalorder %v2949_v16, %v3330_v22 }
 0x1c1   :  { %4278 = vst [vmem:[#allocation69_spill] sm:$0xff] %v3373_v47 }
 0x1c2   :  { %v3376_v38 = vpop.permute.xlu1 %677 }
 0x1c3   :  { %1175 = vperm.xlu0 %2505, %v2852_v43   ;;  %v705_v7 = vpop.permute.xlu0 %704 }
 0x1c4   :  { %2429 = vset.pattern.permute.xlu1 %v4230_v59  ;;  %vm723_vm5 = vcmp.eq.s32.totalorder %v705_v7, %v3330_v22 }
 0x1c5   :  { %840 = vperm.xlu1 %2429, %v2828_v39  }
 0x1c6   :  { %v3382_v36 = vpop.permute.xlu1 %742 }
 0x1c7   :  { %1250 = vperm.xlu0 %2505, %v2957_v18   ;;  %v783_v35 = vpop.permute.xlu0 %782 }
 0x1c8   :  { %v3385_v20 = vsel %vm723_vm5, %v783_v35, 0.0  ;;  %vm550_vm5 = vcmp.eq.s32.totalorder %v3048_v4, %v3330_v22  ;;  %v790_v4 = vsel %vm710_vm7, %v3148_v30, 0.0 }
 0x1c9   :  { %4279 = vst [vmem:[#allocation70_spill] sm:$0xff] %v3385_v20  ;;  %2430 = vset.pattern.permute.xlu1 %v4232_v8  ;;  %v630_v10 = vsel %vm550_vm5, %v3118_v11, 0.0  ;;  %vm1031_vm5 = vcmp.eq.s32.totalorder %v3356_v57, %v3330_v22 }
 0x1ca   :  { %1066 = vperm.xlu1 %2430, %v2917_v48  }
 0x1cb   :  { %1181 = vperm.xlu0 %2505, %v2864_v45   ;;  %v3390_v44 = vpop.permute.xlu1 %1054 }
 0x1cc   :  { %v3392_v47 = vpop.permute.xlu0 %825 }
 0x1ce   :  { %2431 = vset.pattern.permute.xlu1 %v4234_v50 }
 0x1cf   :  { %1184 = vperm.xlu0 %2505, %v2886_v49   ;;  %1378 = vperm.xlu1 %2431, %v2909_v28  }
 0x1d0   :  { %v832_v39 = vpop.permute.xlu0 %831  ;;  %v3397_v7 = vpop.permute.xlu1 %1305 }
 0x1d1   :  { %vm872_vm10 = vcmp.eq.s32.totalorder %v832_v39, %v3330_v22 }
 0x1d2   :  { %v952_v15 = vsel %vm872_vm10, %v3348_v25, 0.0  ;;  %vm869_vm10 = vcmp.eq.s32.totalorder %v3064_v19, %v3330_v22 }
 0x1d3   :  { %1262 = vperm.xlu0 %2505, %v2979_v27   ;;  %2432 = vset.pattern.permute.xlu1 %v4228_v61 }
 0x1d4   :  { %529 = vperm.xlu1 %2432, %v2840_v41   ;;  %v3402_v35 = vpop.permute.xlu0 %864 }
 0x1d5   :  { %4280 = vst [vmem:[#allocation71_spill] sm:$0xff] %v3402_v35  ;;  %v3404_v20 = vpop.permute.xlu1 %434  ;;  %v472_v35 = vsel %vm392_vm6, %v3141_v31, 0.0  ;;  %v792_v31 = vsel %vm712_vm9, %v3308_v40, 0.0  ;;  %vm709_vm6 = vcmp.eq.s32.totalorder %v3055_v14, %v3330_v22  ;;  %v4288_v14 = vld [vmem:[#allocation38_spill] sm:$0xff] }
 0x1d6   :  { %4281 = vst [vmem:[#allocation72_spill] sm:$0xff] %v3404_v20  ;;  %v789_v3 = vsel %vm709_vm6, %v3134_v58, 0.0  ;;  %v3535_v58 = vld [vmem:[%s4179_s0 + $0x38] sm:$0xff] }
 0x1d7   :  { %2511 = vset.pattern.permute.xlu0 %v4234_v50 }
 0x1d8   :  { %1335 = vperm.xlu0 %2511, %v2852_v43   ;;  %2433 = vset.pattern.permute.xlu1 %v4230_v59  ;;  %v312_v43 = vsel %vm216_vm8, %v3082_v2, 0.0  ;;  %vm870_vm8 = vcmp.eq.s32.totalorder %v3392_v47, %v3330_v22  ;;  %v4289_v47 = vld [vmem:[#allocation42_spill] sm:$0xff] }
 0x1d9   :  { %v3411_v28 = vpop.permute.xlu0 %982  ;;  %843 = vperm.xlu1 %2433, %v2846_v42   ;;  %v488_v51 = vadd.f32 %v472_v35, %v312_v43 }
 0x1da   :  { %v3416_v41 = vpop.permute.xlu1 %520  ;;  %vm1029_vm9 = vcmp.eq.s32.totalorder %v3411_v28, %v3330_v22  ;;  %v950_v28 = vsel %vm870_vm8, %v4289_v47, 0.0 }
 0x1db   :  { %4282 = vst [vmem:[#allocation73_spill] sm:$0xff] %v3416_v41  ;;  %v648_v32 = vadd.f32 %v632_v13, %v488_v51 }
 0x1dc   :  { %1410 = vperm.xlu0 %2511, %v2957_v18  }
 0x1dd   :  { %v3426_v42 = vpop.permute.xlu0 %1046  ;;  %910 = vperm.xlu1 %2433, %v2922_v53   ;;  %v808_v33 = vadd.f32 %v792_v31, %v648_v32 }
 0x1de   :  { %v1109_v30 = vsel %vm1029_vm9, %v3426_v42, 0.0  ;;  %v4290_v42 = vld [vmem:[#allocation50_spill] sm:$0xff] }
 0x1df   :  { %v3431_v20 = vpop.permute.xlu1 %834  ;;  %v968_v2 = vadd.f32 %v952_v15, %v808_v33 }
 0x1e0   :  { %1341 = vperm.xlu0 %2511, %v2864_v45  }
 0x1e1   :  { %v992_v41 = vpop.permute.xlu0 %991  ;;  %2434 = vset.pattern.permute.xlu1 %v4262_v52 }
 0x1e2   :  { %vm1032_vm11 = vcmp.eq.s32.totalorder %v992_v41, %v3330_v22  ;;  %1222 = vperm.xlu1 %2434, %v2914_v1  }
 0x1e4   :  { %1344 = vperm.xlu0 %2511, %v2886_v49   ;;  %v1059_v39 = vpop.permute.xlu1 %1058  ;;  %v3453_v49 = vld [vmem:[%s4179_s0 + $0x40] sm:$0xff] }
 0x1e5   :  { %v1112_v40 = vsel %vm1032_vm11, %v1059_v39, 0.0  ;;  %v995_v35 = vpop.permute.xlu0 %994 }
 0x1e6   :  { %v3439_v43 = vadd.f32 %v1112_v40, %v968_v2  ;;  %2435 = vset.pattern.permute.xlu1 %v4238_v12  ;;  %vm1033_vm12 = vcmp.eq.s32.totalorder %v995_v35, %v3330_v22  ;;  %v2584_v40 = vld [vmem:[%s4179_s0 + $0x20] sm:$0xff] }
 0x1e7   :  { %372 = vperm.xlu1 %2435, %v2870_v46  }
 0x1e8   :  { %1426 = vperm.xlu0 %2511, %v2986_v26  }
 0x1e9   :  { %v1063_v45 = vpop.permute.xlu0 %1062  ;;  %v3445_v25 = vpop.permute.xlu1 %1370 }
 0x1ea   :  { %v3447_v41 = vsel %vm1033_vm12, %v1063_v45, 0.0  ;;  %vm1349_vm12 = vcmp.eq.s32.totalorder %v3363_v37, %v3330_v22 }
 0x1eb   :  { %2436 = vset.pattern.permute.xlu1 %v4240_v54 }
 0x1ec   :  { %686 = vperm.xlu1 %2436, %v3453_v49  }
 0x1ed   :  { %v1001_v13 = vpop.permute.xlu0 %1000 }
 0x1ee   :  { %v3456_v51 = vpop.permute.xlu1 %523  ;;  %vm1035_vm13 = vcmp.eq.s32.totalorder %v1001_v13, %v3330_v22  ;;  %v3483_v13 = vld [vmem:[%s4179_s0 + $0x58] sm:$0xff] }
 0x1ef   :  { %4283 = vst [vmem:[#allocation74_spill] sm:$0xff] %v3456_v51 }
 0x1f0   :  { %2437 = vset.pattern.permute.xlu1 %v4230_v59 }
 0x1f1   :  { %v1071_v46 = vpop.permute.xlu0 %1070  ;;  %914 = vperm.xlu1 %2437, %v2925_v56  }
 0x1f2   :  { %v3461_v31 = vsel %vm1035_vm13, %v1071_v46, 0.0  ;;  %vm1030_vm13 = vcmp.eq.s32.totalorder %v4290_v42, %v3330_v22  ;;  %v4297_v42 = vld [vmem:[#allocation5_spill] sm:$0xff] }
 0x1f3   :  { %v3463_v32 = vpop.permute.xlu1 %837 }
 0x1f5   :  { %2438 = vset.pattern.permute.xlu1 %v4262_v52  ;;  %v1007_v15 = vpop.permute.xlu0 %1006 }
 0x1f6   :  { %1226 = vperm.xlu1 %2438, %v2917_v48   ;;  %vm1037_vm14 = vcmp.eq.s32.totalorder %v1007_v15, %v3330_v22 }
 0x1f7   :  { %v3468_v33 = vpop.permute.xlu1 %902 }
 0x1f9   :  { %v1079_v2 = vpop.permute.xlu0 %1078 }
 0x1fa   :  { %v3470_v39 = vsel %vm1037_vm14, %v1079_v2, 0.0  ;;  %2439 = vset.pattern.permute.xlu1 %v4234_v50  ;;  %vm1190_vm14 = vcmp.eq.s32.totalorder %v3328_v34, %v3330_v22 }
 0x1fb   :  { %4284 = vst [vmem:[#allocation75_spill] sm:$0xff] %v3470_v39  ;;  %1314 = vperm.xlu1 %2439, %v2584_v40   ;;  %v469_v40 = vsel %vm389_vm0, %v3098_v6, 0.0  ;;  %v629_v39 = vsel %vm549_vm2, %v3113_v55, 0.0  ;;  %v310_v55 = vsel %vm214_vm4, %v3075_v0, 0.0  ;;  %v949_v0 = vsel %vm869_vm10, %v4288_v14, 0.0 }
 0x1fc   :  { %v3476_v35 = vpop.permute.xlu1 %1214  ;;  %vm215_vm2 = vcmp.eq.s32.totalorder %v4297_v42, %v3330_v22 }
 0x1fd   :  { %v1013_v45 = vpop.permute.xlu0 %1012 }
 0x1fe   :  { %vm1039_vm15 = vcmp.eq.s32.totalorder %v1013_v45, %v3330_v22  ;;  %v309_v45 = vsel %vm213_vm1, %v3072_v24, 0.0 }
 0x1ff   :  { %2440 = vset.pattern.permute.xlu1 %v4238_v12  ;;  %v485_v62 = vadd.f32 %v469_v40, %v309_v45 }
 0x200   :  { %375 = vperm.xlu1 %2440, %v3483_v13  }
 0x201   :  { %v3486_v46 = vpop.permute.xlu1 %366  ;;  %v1087_v15 = vpop.permute.xlu0 %1086  ;;  %v645_v51 = vadd.f32 %v629_v39, %v485_v62  ;;  %v486_v39 = vadd.f32 %v470_v23, %v310_v55  ;;  %v2587_v55 = vld [vmem:[%s4179_s0 + $0x28] sm:$0xff] }
 0x202   :  { %4285 = vst [vmem:[#allocation76_spill] sm:$0xff] %v3486_v46  ;;  %v3494_v2 = vsel %vm1039_vm15, %v1087_v15, 0.0  ;;  %vm1350_vm15 = vcmp.eq.s32.totalorder %v3397_v7, %v3330_v22  ;;  %v3574_v7 = vld [vmem:[%s4179_s0 + $0x50] sm:$0xff] }
 0x203   :  { %v805_v16 = vadd.f32 %v789_v3, %v645_v51  ;;  %v646_v5 = vadd.f32 %v630_v10, %v486_v39  ;;  %v4291_v3 = vld [vmem:[#allocation59_spill] sm:$0xff] }
 0x204   :  { %446 = vperm.xlu1 %2440, %v2952_v21   ;;  %v1110_v39 = vsel %vm1030_vm13, %v4291_v3, 0.0 }
 0x205   :  { %v3500_v46 = vpop.permute.xlu0 %1024  ;;  %v806_v51 = vadd.f32 %v790_v4, %v646_v5  ;;  %v965_v15 = vadd.f32 %v949_v0, %v805_v16  ;;  %v4292_v4 = vld [vmem:[#allocation27_spill] sm:$0xff] }
 0x206   :  { %4286 = vst [vmem:[#allocation77_spill] sm:$0xff] %v3500_v46  ;;  %v3504_v60 = vpop.permute.xlu1 %680  ;;  %v1429_v37 = vsel %vm1349_vm12, %v4292_v4, 0.0 }
 0x207   :  { %v966_v40 = vadd.f32 %v950_v28, %v806_v51  ;;  %v1125_v45 = vadd.f32 %v1109_v30, %v965_v15  ;;  %v1430_v28 = vsel %vm1350_vm15, %v3445_v25, 0.0  ;;  %vm873_vm15 = vcmp.eq.s32.totalorder %v3431_v20, %v3330_v22 }
 0x208   :  { %2441 = vset.pattern.permute.xlu1 %v4240_v54 }
 0x209   :  { %758 = vperm.xlu1 %2441, %v2940_v63   ;;  %v3509_v6 = vpop.permute.xlu0 %1027 }
 0x20a   :  { %4287 = vst [vmem:[#allocation78_spill] sm:$0xff] %v3509_v6 }
 0x20b   :  { %v3522_v24 = vpop.permute.xlu1 %906 }
 0x20d   :  { %2442 = vset.pattern.permute.xlu1 %v4232_v8 }
 0x20e   :  { %v1143_v11 = vpop.permute.xlu0 %1142  ;;  %1003 = vperm.xlu1 %2442, %v3535_v58  }
 0x20f   :  { %vm1189_vm11 = vcmp.eq.s32.totalorder %v1143_v11, %v3330_v22  ;;  %v1126_v11 = vadd.f32 %v1110_v39, %v966_v40  ;;  %v4299_v39 = vld [vmem:[#allocation36_spill] sm:$0xff] }
 0x210   :  { %v3542_v19 = vpop.permute.xlu1 %1218 }
 0x212   :  { %v1207_v62 = vpop.permute.xlu0 %1206  ;;  %2443 = vset.pattern.permute.xlu1 %v4234_v50 }
 0x213   :  { %v1269_v23 = vsel %vm1189_vm11, %v1207_v62, 0.0  ;;  %1317 = vperm.xlu1 %2443, %v2587_v55  }
 0x214   :  { %v1285_v10 = vadd.f32 %v1269_v23, %v1125_v45  ;;  %v4295_v45 = vld [vmem:[#allocation40_spill] sm:$0xff]  ;;  %v4296_v23 = vld [vmem:[#allocation30_spill] sm:$0xff] }
 0x215   :  { %v1309_v16 = vpop.permute.xlu1 %1308  ;;  %vm551_vm1 = vcmp.eq.s32.totalorder %v4295_v45, %v3330_v22 }
 0x216   :  { %v1211_v5 = vpop.permute.xlu0 %1210  ;;  %v1445_v14 = vadd.f32 %v1429_v37, %v1285_v10  ;;  %v4298_v10 = vld [vmem:[#allocation21_spill] sm:$0xff]  ;;  %v631_v4 = vsel %vm551_vm1, %v4299_v39, 0.0  ;;  %vm1351_vm7 = vcmp.eq.s32.totalorder %v1309_v16, %v3330_v22  ;;  %v3628_v16 = vld [vmem:[%s4179_s0 + $0x48] sm:$0xff] }
 0x217   :  { %v1270_v0 = vsel %vm1190_vm14, %v1211_v5, 0.0  ;;  %1382 = vperm.xlu1 %2443, %v2914_v1   ;;  %v4294_v1 = vld [vmem:[#allocation14_spill] sm:$0xff]  ;;  %v311_v3 = vsel %vm215_vm2, %v4298_v10, 0.0  ;;  %vm713_vm14 = vcmp.eq.s32.totalorder %v3321_v17, %v3330_v22 }
 0x218   :  { %v1286_v47 = vadd.f32 %v1270_v0, %v1126_v11  ;;  %2270 = vmatprep.mubr.f32.mxu0 %v1445_v14  ;;  %vm391_vm0 = vcmp.eq.s32.totalorder %v4294_v1, %v3330_v22  ;;  %v4300_v11 = vld [vmem:[#allocation41_spill] sm:$0xff]  ;;  %v4301_v14 = vld [vmem:[#allocation48_spill] sm:$0xff]  ;;  %v4303_v1 = vld [vmem:[#allocation62_spill] sm:$0xff] }
 0x219   :  { %v471_v55 = vsel %vm391_vm0, %v4296_v23, 0.0  ;;  %vm711_vm3 = vcmp.eq.s32.totalorder %v4300_v11, %v3330_v22 }
 0x21a   :  { %v1446_v30 = vadd.f32 %v1430_v28, %v1286_v47  ;;  %v1149_v51 = vpop.permute.xlu0 %1148  ;;  %v3560_v15 = vpop.permute.xlu1 %369  ;;  %v487_v5 = vadd.f32 %v471_v55, %v311_v3  ;;  %v791_v0 = vsel %vm711_vm3, %v4301_v14, 0.0  ;;  %v1111_v55 = vsel %vm1031_vm5, %v3390_v44, 0.0 }
 0x21b   :  { %4293 = vst [vmem:[#allocation38_spill] sm:$0xff] %v3560_v15  ;;  %2444 = vset.pattern.permute.xlu1 %v4238_v12  ;;  %vm1191_vm6 = vcmp.eq.s32.totalorder %v1149_v51, %v3330_v22  ;;  %vm714_vm5 = vcmp.eq.s32.totalorder %v3376_v38, %v3330_v22 }
 0x21c   :  { %450 = vperm.xlu1 %2444, %v2957_v18   ;;  %2271 = vmatmul.mubr.f32.vlgmr.msra.gmra.mxu0 %v1446_v30  ;;  %v647_v28 = vadd.f32 %v631_v4, %v487_v5  ;;  %v4302_v30 = vld [vmem:[#allocation57_spill] sm:$0xff]  ;;  %v1271_v39 = vsel %vm1191_vm6, %v3476_v35, 0.0  ;;  %vm874_vm6 = vcmp.eq.s32.totalorder %v3463_v32, %v3330_v22 }
 0x21d   :  { %vm871_vm4 = vcmp.eq.s32.totalorder %v4302_v30, %v3330_v22 }
 0x21e   :  { %v3564_v34 = vpop.permute.xlu0 %1151  ;;  %v3566_v40 = vpop.permute.xlu1 %438  ;;  %v951_v45 = vsel %vm871_vm4, %v4303_v1, 0.0  ;;  %v807_v42 = vadd.f32 %v791_v0, %v647_v28 }
 0x21f   :  { %vm1192_vm8 = vcmp.eq.s32.totalorder %v3564_v34, %v3330_v22 }
 0x220   :  { %2445 = vset.pattern.permute.xlu1 %v4228_v61  ;;  %v967_v10 = vadd.f32 %v951_v45, %v807_v42 }
 0x221   :  { %532 = vperm.xlu1 %2445, %v3574_v7  }
 0x222   :  { %v3577_v25 = vpop.permute.xlu0 %1154  ;;  %v1127_v5 = vadd.f32 %v1111_v55, %v967_v10  ;;  %v1272_v10 = vsel %vm1192_vm8, %v3542_v19, 0.0 }
 0x223   :  { %v3581_v62 = vpop.permute.xlu1 %750  ;;  %vm1193_vm0 = vcmp.eq.s32.totalorder %v3577_v25, %v3330_v22 }
 0x224   :  { %v1287_v57 = vadd.f32 %v1271_v39, %v1127_v5  ;;  %v3653_v39 = vld [vmem:[%s4179_s0 + $0x60] sm:$0xff]  ;;  %v1288_v5 = vadd.f32 %v1272_v10, %v3439_v43  ;;  %v2591_v10 = vld [vmem:[%s4179_s0 + $0x30] sm:$0xff] }
 0x225   :  { %2446 = vset.pattern.permute.xlu1 %v4230_v59 }
 0x226   :  { %v3589_v37 = vpop.permute.xlu0 %1157  ;;  %846 = vperm.xlu1 %2446, %v3453_v49  }
 0x228   :  { %v3595_v47 = vpop.permute.xlu1 %997 }
 0x229   :  { %vm1034_vm8 = vcmp.eq.s32.totalorder %v3595_v47, %v3330_v22 }
 0x22a   :  { %v3600_v23 = vpop.permute.xlu0 %1160  ;;  %2447 = vset.pattern.permute.xlu1 %v4232_v8 }
 0x22b   :  { %1074 = vperm.xlu1 %2447, %v2925_v56  }
 0x22d   :  { %v1312_v3 = vpop.permute.xlu1 %1311 }
 0x22e   :  { %v3609_v4 = vpop.permute.xlu0 %1163  ;;  %vm1352_vm9 = vcmp.eq.s32.totalorder %v1312_v3, %v3330_v22 }
 0x22f   :  { %2448 = vset.pattern.permute.xlu1 %v4234_v50 }
 0x230   :  { %1386 = vperm.xlu1 %2448, %v2917_v48  }
 0x231   :  { %v1375_v11 = vpop.permute.xlu1 %1374 }
 0x232   :  { %v1431_v51 = vsel %vm1351_vm7, %v1375_v11, 0.0  ;;  %v3614_v14 = vpop.permute.xlu0 %1166  ;;  %vm1194_vm7 = vcmp.eq.s32.totalorder %v3589_v37, %v3330_v22 }
 0x233   :  { %4304 = vst [vmem:[#allocation42_spill] sm:$0xff] %v3614_v14  ;;  %v1447_v0 = vadd.f32 %v1431_v51, %v1287_v57  ;;  %v4321_v14 = vld [vmem:[#allocation61_spill] sm:$0xff] }
 0x234   :  { %2449 = vset.pattern.permute.xlu1 %v4228_v61 }
 0x235   :  { %535 = vperm.xlu1 %2449, %v3483_v13   ;;  %2273 = vmatprep.mubr.f32.mxu0 %v1447_v0 }
 0x236   :  { %v3618_v44 = vpop.permute.xlu0 %1169  ;;  %v3620_v35 = vpop.permute.xlu1 %442 }
 0x237   :  { %4305 = vst [vmem:[#allocation50_spill] sm:$0xff] %v3618_v44  ;;  %4306 = vst [vmem:[#allocation59_spill] sm:$0xff] %v3620_v35  ;;  %v4318_v44 = vld [vmem:[#allocation8_spill] sm:$0xff] }
 0x238   :  { %vm217_vm12 = vcmp.eq.s32.totalorder %v4318_v44, %v3330_v22 }
 0x239   :  { %2450 = vset.pattern.permute.xlu1 %v4230_v59 }
 0x23a   :  { %v3623_v48 = vpop.permute.xlu0 %1172  ;;  %849 = vperm.xlu1 %2450, %v3628_v16  }
 0x23b   :  { %4307 = vst [vmem:[#allocation27_spill] sm:$0xff] %v3623_v48  ;;  %v3631_v28 = vpop.permute.xlu1 %526  ;;  %v4317_v48 = vld [vmem:[#allocation46_spill] sm:$0xff] }
 0x23e   :  { %v3633_v30 = vpop.permute.xlu0 %1175  ;;  %918 = vperm.xlu1 %2450, %v2940_v63  }
 0x23f   :  { %4308 = vst [vmem:[#allocation14_spill] sm:$0xff] %v3633_v30  ;;  %v4316_v30 = vld [vmem:[#allocation39_spill] sm:$0xff] }
 0x240   :  { %v3636_v1 = vpop.permute.xlu1 %840  ;;  %vm393_vm11 = vcmp.eq.s32.totalorder %v4316_v30, %v3330_v22 }
 0x242   :  { %v3638_v45 = vpop.permute.xlu0 %1250  ;;  %2451 = vset.pattern.permute.xlu1 %v4262_v52 }
 0x243   :  { %4309 = vst [vmem:[#allocation40_spill] sm:$0xff] %v3638_v45  ;;  %1230 = vperm.xlu1 %2451, %v2922_v53  }
 0x245   :  { %v3644_v42 = vpop.permute.xlu1 %1066 }
 0x246   :  { %v3646_v55 = vpop.permute.xlu0 %1181 }
 0x247   :  { %4310 = vst [vmem:[#allocation30_spill] sm:$0xff] %v3646_v55  ;;  %2452 = vset.pattern.permute.xlu1 %v4238_v12  ;;  %v4315_v55 = vld [vmem:[#allocation7_spill] sm:$0xff] }
 0x248   :  { %378 = vperm.xlu1 %2452, %v3653_v39  }
 0x24a   :  { %v1379_v34 = vpop.permute.xlu1 %1378  ;;  %v1185_v57 = vpop.permute.xlu0 %1184 }
 0x24b   :  { %v1432_v11 = vsel %vm1352_vm9, %v1379_v34, 0.0  ;;  %vm1203_vm10 = vcmp.eq.s32.totalorder %v1185_v57, %v3330_v22  ;;  %v3681_v34 = vld [vmem:[%s4179_s0 + $0x68] sm:$0xff] }
 0x24c   :  { %v1448_v51 = vadd.f32 %v1432_v11, %v1288_v5  ;;  %2453 = vset.pattern.permute.xlu1 %v4240_v54  ;;  %v4313_v11 = vld [vmem:[#allocation6_spill] sm:$0xff] }
 0x24d   :  { %692 = vperm.xlu1 %2453, %v3574_v7  }
 0x24e   :  { %2274 = vmatmul.mubr.f32.gmra.mxu0 %v1448_v51  ;;  %v1263_v19 = vpop.permute.xlu0 %1262 }
 0x24f   :  { %v3661_v0 = vsel %vm1203_vm10, %v1263_v19, 0.0  ;;  %v3663_v6 = vpop.permute.xlu1 %529  ;;  %vm1653_vm10 = vcmask 261120  }
 0x250   :  { %4311 = vst [vmem:[#allocation5_spill] sm:$0xff] %v3661_v0  ;;  %4312 = vst [vmem:[#allocation21_spill] sm:$0xff] %v3663_v6  ;;  %v4320_v6 = vld [vmem:[#allocation22_spill] sm:$0xff] }
 0x251   :  { %2454 = vset.pattern.permute.xlu1 %v4230_v59  ;;  %v313_v15 = vsel %vm217_vm12, %v4320_v6, 0.0  ;;  %v2513_v6 = vld [vmem:[%s4182_s3 + $0x8] sm:$0xff]  }
 0x252   :  { %922 = vperm.xlu1 %2454, %v2945_v9   ;;  %2294 = vmatprep.subr.bf16.mxu1 %v2513_v6 }
 0x253   :  { %2295 = vmatpush3.bf16.msra.mxu1 %v2513_v6  ;;  %v4325_v6 = vld [vmem:[#allocation60_spill] sm:$0xff] }
 0x254   :  { %v3667_v43 = vpop.permute.xlu1 %843  ;;  %vm554_vm4 = vcmp.eq.s32.totalorder %v4325_v6, %v3330_v22 }
 0x256   :  { %2455 = vset.pattern.permute.xlu1 %v4262_v52 }
 0x257   :  { %1234 = vperm.xlu1 %2455, %v2925_v56  }
 0x258   :  { %v3671_v3 = vpop.permute.xlu1 %910 }
 0x25b   :  { %2456 = vset.pattern.permute.xlu1 %v4234_v50 }
 0x25c   :  { %1320 = vperm.xlu1 %2456, %v2591_v10  }
 0x25d   :  { %v1223_v5 = vpop.permute.xlu1 %1222 }
 0x260   :  { %2457 = vset.pattern.permute.xlu1 %v4238_v12 }
 0x261   :  { %381 = vperm.xlu1 %2457, %v3681_v34  }
 0x262   :  { %v3684_v57 = vpop.permute.xlu1 %372 }
 0x265   :  { %454 = vperm.xlu1 %2457, %v4313_v11  }
 0x267   :  { %v3687_v51 = vpop.permute.xlu1 %686 }
 0x268   :  { %4314 = vst [vmem:[#allocation36_spill] sm:$0xff] %v3687_v51 }
 0x269   :  { %2458 = vset.pattern.permute.xlu1 %v4240_v54 }
 0x26a   :  { %766 = vperm.xlu1 %2458, %v2952_v21  }
 0x26c   :  { %v3691_v19 = vpop.permute.xlu1 %914 }
 0x26e   :  { %2459 = vset.pattern.permute.xlu1 %v4232_v8 }
 0x26f   :  { %1009 = vperm.xlu1 %2459, %v3628_v16  }
 0x271   :  { %v3695_v10 = vpop.permute.xlu1 %1226 }
 0x272   :  { %v1274_v32 = vsel %vm1194_vm7, %v3695_v10, 0.0 }
 0x273   :  { %2460 = vset.pattern.permute.xlu1 %v4234_v50 }
 0x274   :  { %1323 = vperm.xlu1 %2460, %v3535_v58   ;;  %v473_v58 = vsel %vm393_vm11, %v4317_v48, 0.0  ;;  %v793_v48 = vsel %vm713_vm14, %v3382_v36, 0.0  ;;  %v2514_v36 = vld [vmem:[%s4182_s3] sm:$0xff]   ;;  %vm715_vm14 = vcmp.eq.s32.totalorder %v3504_v60, %v3330_v22 }
 0x275   :  { %v489_v30 = vadd.f32 %v473_v58, %v313_v15  ;;  %2296 = vmatprep.subr.bf16.mxu1 %v2514_v36 }
 0x276   :  { %v1315_v0 = vpop.permute.xlu1 %1314  ;;  %2297 = vmatpush3.bf16.msra.mxu1 %v2514_v36  ;;  %v634_v36 = vsel %vm554_vm4, %v3342_v29, 0.0  ;;  %v1114_v29 = vsel %vm1034_vm8, %v3644_v42, 0.0 }
 0x277   :  { %vm1353_vm1 = vcmp.eq.s32.totalorder %v1315_v0, %v3330_v22  ;;  %v4323_v0 = vld [vmem:[#allocation52_spill] sm:$0xff] }
 0x278   :  { %1390 = vperm.xlu1 %2460, %v2922_v53   ;;  %v4319_v53 = vld [vmem:[#allocation55_spill] sm:$0xff] }
 0x279   :  { %vm553_vm13 = vcmp.eq.s32.totalorder %v4319_v53, %v3330_v22  ;;  %v953_v53 = vsel %vm873_vm15, %v3468_v33, 0.0  ;;  %v1273_v33 = vsel %vm1193_vm0, %v1223_v5, 0.0  ;;  %vm875_vm15 = vcmp.eq.s32.totalorder %v3636_v1, %v3330_v22 }
 0x27a   :  { %v633_v51 = vsel %vm553_vm13, %v4321_v14, 0.0  ;;  %vm1195_vm0 = vcmp.eq.s32.totalorder %v3600_v23, %v3330_v22  ;;  %v4335_v23 = vld [vmem:[#allocation74_spill] sm:$0xff] }
 0x27b   :  { %v3700_v46 = vpop.permute.xlu1 %375  ;;  %v649_v44 = vadd.f32 %v633_v51, %v489_v30 }
 0x27c   :  { %2461 = vset.pattern.permute.xlu1 %v4238_v12 }
 0x27d   :  { %458 = vperm.xlu1 %2461, %v4315_v55   ;;  %v809_v14 = vadd.f32 %v793_v48, %v649_v44 }
 0x27f   :  { %v3704_v45 = vpop.permute.xlu1 %446  ;;  %v969_v15 = vadd.f32 %v953_v53, %v809_v14  ;;  %v4324_v53 = vld [vmem:[#allocation9_spill] sm:$0xff]  ;;  %v4326_v14 = vld [vmem:[#allocation23_spill] sm:$0xff] }
 0x280   :  { %vm218_vm3 = vcmp.eq.s32.totalorder %v4324_v53, %v3330_v22 }
 0x281   :  { %2462 = vset.pattern.permute.xlu1 %v4228_v61  ;;  %v1129_v51 = vadd.f32 %v3447_v41, %v969_v15  ;;  %v314_v15 = vsel %vm218_vm3, %v4326_v14, 0.0  ;;  %vm556_vm3 = vcmp.eq.s32.totalorder %v4335_v23, %v3330_v22  ;;  %v4341_v23 = vld [vmem:[#allocation19_spill] sm:$0xff] }
 0x282   :  { %538 = vperm.xlu1 %2462, %v3653_v39  }
 0x283   :  { %v1289_v58 = vadd.f32 %v1273_v33, %v1129_v51 }
 0x284   :  { %v3717_v35 = vpop.permute.xlu1 %758 }
 0x286   :  { %2463 = vset.pattern.permute.xlu1 %v4230_v59 }
 0x287   :  { %852 = vperm.xlu1 %2463, %v3574_v7  }
 0x289   :  { %v3727_v17 = vpop.permute.xlu1 %1003 }
 0x28a   :  { %vm1036_vm7 = vcmp.eq.s32.totalorder %v3727_v17, %v3330_v22 }
 0x28b   :  { %2464 = vset.pattern.permute.xlu1 %v4232_v8 }
 0x28c   :  { %1082 = vperm.xlu1 %2464, %v2945_v9  }
 0x28e   :  { %v1318_v20 = vpop.permute.xlu1 %1317 }
 0x28f   :  { %vm1354_vm9 = vcmp.eq.s32.totalorder %v1318_v20, %v3330_v22 }
 0x290   :  { %2465 = vset.pattern.permute.xlu1 %v4234_v50 }
 0x291   :  { %1394 = vperm.xlu1 %2465, %v2925_v56   ;;  %v4322_v56 = vld [vmem:[#allocation44_spill] sm:$0xff] }
 0x292   :  { %v1383_v25 = vpop.permute.xlu1 %1382  ;;  %vm394_vm2 = vcmp.eq.s32.totalorder %v4322_v56, %v3330_v22 }
 0x293   :  { %v1433_v30 = vsel %vm1353_vm1, %v1383_v25, 0.0  ;;  %v474_v44 = vsel %vm394_vm2, %v4323_v0, 0.0 }
 0x294   :  { %v1449_v48 = vadd.f32 %v1433_v30, %v1289_v58  ;;  %v490_v33 = vadd.f32 %v474_v44, %v314_v15  ;;  %v4327_v58 = vld [vmem:[#allocation63_spill] sm:$0xff]  ;;  %v3802_v15 = vld [vmem:[%s4179_s0 + $0x78] sm:$0xff] }
 0x295   :  { %2466 = vset.pattern.permute.xlu1 %v4228_v61  ;;  %v794_v25 = vsel %vm714_vm5, %v4327_v58, 0.0  ;;  %vm876_vm5 = vcmp.eq.s32.totalorder %v3667_v43, %v3330_v22 }
 0x296   :  { %541 = vperm.xlu1 %2466, %v3681_v34   ;;  %2276 = vmatprep.mubr.f32.mxu0 %v1449_v48  ;;  %v650_v30 = vadd.f32 %v634_v36, %v490_v33  ;;  %v954_v48 = vsel %vm874_vm6, %v3522_v24, 0.0  ;;  %v2593_v24 = vld [vmem:[%s4179_s0 + $0x70] sm:$0xff]  ;;  %vm1196_vm6 = vcmp.eq.s32.totalorder %v3609_v4, %v3330_v22 }
 0x297   :  { %v3745_v5 = vpop.permute.xlu1 %450 }
 0x298   :  { %v810_v38 = vadd.f32 %v794_v25, %v650_v30 }
 0x29a   :  { %2467 = vset.pattern.permute.xlu1 %v4230_v59  ;;  %v970_v0 = vadd.f32 %v954_v48, %v810_v38 }
 0x29b   :  { %855 = vperm.xlu1 %2467, %v3483_v13  }
 0x29c   :  { %v3749_v41 = vpop.permute.xlu1 %532  ;;  %v1130_v44 = vadd.f32 %v1114_v29, %v970_v0  ;;  %v4328_v0 = vld [vmem:[#allocation64_spill] sm:$0xff] }
 0x29d   :  { %vm395_vm11 = vcmp.eq.s32.totalorder %v4328_v0, %v3330_v22 }
 0x29e   :  { %v1290_v53 = vadd.f32 %v1274_v32, %v1130_v44  ;;  %v4331_v32 = vld [vmem:[#allocation10_spill] sm:$0xff] }
 0x29f   :  { %926 = vperm.xlu1 %2467, %v2952_v21   ;;  %vm219_vm13 = vcmp.eq.s32.totalorder %v4331_v32, %v3330_v22 }
 0x2a1   :  { %v3763_v51 = vpop.permute.xlu1 %846 }
 0x2a3   :  { %2468 = vset.pattern.permute.xlu1 %v4262_v52 }
 0x2a4   :  { %1238 = vperm.xlu1 %2468, %v2940_v63  }
 0x2a6   :  { %v3776_v56 = vpop.permute.xlu1 %1074 }
 0x2a8   :  { %2469 = vset.pattern.permute.xlu1 %v4238_v12 }
 0x2a9   :  { %384 = vperm.xlu1 %2469, %v2593_v24  }
 0x2ab   :  { %v1387_v37 = vpop.permute.xlu1 %1386 }
 0x2ac   :  { %v1434_v47 = vsel %vm1354_vm9, %v1387_v37, 0.0  ;;  %vm226_vm9 = vcmp.eq.s32.totalorder %v4341_v23, %v3330_v22  ;;  %v4349_v23 = vld [vmem:[#allocation32_spill] sm:$0xff] }
 0x2ad   :  { %v1450_v6 = vadd.f32 %v1434_v47, %v1290_v53  ;;  %2470 = vset.pattern.permute.xlu1 %v4240_v54  ;;  %v4332_v53 = vld [vmem:[#allocation24_spill] sm:$0xff]  ;;  %v4333_v47 = vld [vmem:[#allocation43_spill] sm:$0xff] }
 0x2ae   :  { %698 = vperm.xlu1 %2470, %v3653_v39   ;;  %v315_v37 = vsel %vm219_vm13, %v4332_v53, 0.0  ;;  %vm559_vm13 = vcmp.eq.s32.totalorder %v3749_v41, %v3330_v22  ;;  %v4346_v41 = vld [vmem:[#allocation51_spill] sm:$0xff] }
 0x2af   :  { %2277 = vmatmul.mubr.f32.gmra.mxu0 %v1450_v6 }
 0x2b0   :  { %v3786_v42 = vpop.permute.xlu1 %535 }
 0x2b2   :  { %2471 = vset.pattern.permute.xlu1 %v4230_v59 }
 0x2b3   :  { %930 = vperm.xlu1 %2471, %v2957_v18  }
 0x2b5   :  { %v3790_v10 = vpop.permute.xlu1 %849 }
 0x2b7   :  { %2472 = vset.pattern.permute.xlu1 %v4262_v52 }
 0x2b8   :  { %1242 = vperm.xlu1 %2472, %v2945_v9  }
 0x2b9   :  { %v3794_v20 = vpop.permute.xlu1 %918 }
 0x2bc   :  { %2473 = vset.pattern.permute.xlu1 %v4234_v50 }
 0x2bd   :  { %1326 = vperm.xlu1 %2473, %v3453_v49  }
 0x2be   :  { %v1231_v14 = vpop.permute.xlu1 %1230 }
 0x2c1   :  { %2474 = vset.pattern.permute.xlu1 %v4238_v12 }
 0x2c2   :  { %387 = vperm.xlu1 %2474, %v3802_v15  }
 0x2c3   :  { %v3805_v36 = vpop.permute.xlu1 %378 }
 0x2c6   :  { %462 = vperm.xlu1 %2474, %v2979_v27  }
 0x2c8   :  { %v3808_v33 = vpop.permute.xlu1 %692 }
 0x2ca   :  { %2475 = vset.pattern.permute.xlu1 %v4240_v54 }
 0x2cb   :  { %774 = vperm.xlu1 %2475, %v4313_v11  }
 0x2cd   :  { %v3812_v49 = vpop.permute.xlu1 %922 }
 0x2cf   :  { %2476 = vset.pattern.permute.xlu1 %v4232_v8 }
 0x2d0   :  { %1015 = vperm.xlu1 %2476, %v3483_v13  }
 0x2d2   :  { %v3816_v58 = vpop.permute.xlu1 %1234 }
 0x2d3   :  { %v1276_v43 = vsel %vm1196_vm6, %v3816_v58, 0.0 }
 0x2d4   :  { %2477 = vset.pattern.permute.xlu1 %v4234_v50 }
 0x2d5   :  { %1329 = vperm.xlu1 %2477, %v3628_v16   ;;  %v4330_v16 = vld [vmem:[#allocation26_spill] sm:$0xff] }
 0x2d7   :  { %v1321_v25 = vpop.permute.xlu1 %1320 }
 0x2d8   :  { %vm1355_vm1 = vcmp.eq.s32.totalorder %v1321_v25, %v3330_v22 }
 0x2d9   :  { %1398 = vperm.xlu1 %2477, %v2940_v63   ;;  %v4329_v63 = vld [vmem:[#allocation73_spill] sm:$0xff] }
 0x2da   :  { %vm555_vm12 = vcmp.eq.s32.totalorder %v4329_v63, %v3330_v22 }
 0x2db   :  { %v635_v6 = vsel %vm555_vm12, %v4333_v47, 0.0  ;;  %v4338_v47 = vld [vmem:[#allocation25_spill] sm:$0xff]  ;;  %vm399_vm12 = vcmp.eq.s32.totalorder %v3684_v57, %v3330_v22  ;;  %v4345_v57 = vld [vmem:[#allocation31_spill] sm:$0xff] }
 0x2dc   :  { %v2272_v30 = vpop.f32.mrf.mxu0  ;;  %v3821_v48 = vpop.permute.xlu1 %381 }
 0x2dd   :  { %2479 = vset.pattern.permute.xlu1 %v4238_v12  ;;  %v475_v12 = vsel %vm395_vm11, %v4330_v16, 0.0  ;;  %v1275_v16 = vsel %vm1195_vm0, %v1231_v14, 0.0  ;;  %vm402_vm11 = vcmp.eq.s32.totalorder %v3821_v48, %v3330_v22  ;;  %vm719_vm0 = vcmp.eq.s32.totalorder %v3808_v33, %v3330_v22 }
 0x2de   :  { %v1543_v38 = vpop.f32.mrf.mxu0  ;;  %466 = vperm.xlu1 %2479, %v2986_v26  }
 0x2df   :  { %v1622_v29 = vpack.c.bf16 %v2272_v30, %v1543_v38  ;;  %v491_v30 = vadd.f32 %v475_v12, %v315_v37  ;;  %v795_v38 = vsel %vm715_vm14, %v3581_v62, 0.0  ;;  %v4337_v37 = vld [vmem:[#allocation11_spill] sm:$0xff] }
 0x2e0   :  { %v3825_v13 = vpop.permute.xlu1 %454  ;;  %vm220_vm4 = vcmp.eq.s32.totalorder %v4337_v37, %v3330_v22 }
 0x2e1   :  { %2298 = vmatprep.mubr.msk.bf16.mxu1 %vm1653_vm10, %v1622_v29  ;;  %v955_v29 = vsel %vm875_vm15, %v3671_v3, 0.0 }
 0x2e2   :  { %2480 = vset.pattern.permute.xlu1 %v4228_v61 }
 0x2e3   :  { %544 = vperm.xlu1 %2480, %v2593_v24   ;;  %v651_v24 = vadd.f32 %v635_v6, %v491_v30  ;;  %v316_v6 = vsel %vm220_vm4, %v4338_v47, 0.0  ;;  %v4339_v30 = vld [vmem:[#allocation45_spill] sm:$0xff]  ;;  %v479_v47 = vsel %vm399_vm12, %v3704_v45, 0.0  ;;  %vm560_vm4 = vcmp.eq.s32.totalorder %v3786_v42, %v3330_v22 }
 0x2e5   :  { %v3836_v44 = vpop.permute.xlu1 %766  ;;  %v811_v63 = vadd.f32 %v795_v38, %v651_v24  ;;  %v636_v38 = vsel %vm556_vm3, %v4339_v30, 0.0  ;;  %v4344_v30 = vld [vmem:[#allocation13_spill] sm:$0xff]  ;;  %vm400_vm3 = vcmp.eq.s32.totalorder %v3700_v46, %v3330_v22  ;;  %v4351_v46 = vld [vmem:[#allocation67_spill] sm:$0xff] }
 0x2e6   :  { %vm223_vm15 = vcmp.eq.s32.totalorder %v4344_v30, %v3330_v22 }
 0x2e7   :  { %2481 = vset.pattern.permute.xlu1 %v4230_v59  ;;  %v971_v60 = vadd.f32 %v955_v29, %v811_v63 }
 0x2e8   :  { %858 = vperm.xlu1 %2481, %v3653_v39  }
 0x2e9   :  { %v1131_v12 = vadd.f32 %v3461_v31, %v971_v60  ;;  %v4334_v31 = vld [vmem:[#allocation68_spill] sm:$0xff]  ;;  %v956_v60 = vsel %vm876_vm5, %v3691_v19, 0.0 }
 0x2ea   :  { %v3848_v0 = vpop.permute.xlu1 %1009  ;;  %vm396_vm2 = vcmp.eq.s32.totalorder %v4334_v31, %v3330_v22 }
 0x2eb   :  { %v1291_v1 = vadd.f32 %v1275_v16, %v1131_v12  ;;  %v4340_v16 = vld [vmem:[#allocation65_spill] sm:$0xff] }
 0x2ec   :  { %2482 = vset.pattern.permute.xlu1 %v4232_v8 }
 0x2ed   :  { %1090 = vperm.xlu1 %2482, %v2957_v18  }
 0x2ef   :  { %v1324_v62 = vpop.permute.xlu1 %1323 }
 0x2f0   :  { %vm1356_vm8 = vcmp.eq.s32.totalorder %v1324_v62, %v3330_v22 }
 0x2f1   :  { %2483 = vset.pattern.permute.xlu1 %v4234_v50 }
 0x2f2   :  { %1402 = vperm.xlu1 %2483, %v2945_v9   ;;  %v4336_v9 = vld [vmem:[#allocation72_spill] sm:$0xff] }
 0x2f3   :  { %v1391_v3 = vpop.permute.xlu1 %1390  ;;  %v476_v14 = vsel %vm396_vm2, %v4336_v9, 0.0  ;;  %v4342_v9 = vld [vmem:[#allocation34_spill] sm:$0xff] }
 0x2f4   :  { %v1435_v32 = vsel %vm1355_vm1, %v1391_v3, 0.0  ;;  %v492_v24 = vadd.f32 %v476_v14, %v316_v6  ;;  %v322_v14 = vsel %vm226_vm9, %v4342_v9, 0.0 }
 0x2f5   :  { %v1451_v53 = vadd.f32 %v1435_v32, %v1291_v1  ;;  %v1116_v1 = vsel %vm1036_vm7, %v3776_v56, 0.0 }
 0x2f6   :  { %2484 = vset.pattern.permute.xlu1 %v4228_v61  ;;  %v652_v29 = vadd.f32 %v636_v38, %v492_v24  ;;  %v319_v24 = vsel %vm223_vm15, %v4345_v57, 0.0 }
 0x2f7   :  { %547 = vperm.xlu1 %2484, %v3802_v15   ;;  %2279 = vmatprep.mubr.f32.mxu0 %v1451_v53 }
 0x2f8   :  { %v459_v18 = vpop.permute.xlu1 %458  ;;  %v812_v12 = vadd.f32 %v4340_v16, %v652_v29  ;;  %v639_v29 = vsel %vm559_vm13, %v4346_v41, 0.0  ;;  %v4347_v16 = vld [vmem:[#allocation69_spill] sm:$0xff]  ;;  %vm877_vm13 = vcmp.eq.s32.totalorder %v3763_v51, %v3330_v22 }
 0x2f9   :  { %v482_v58 = vsel %vm402_vm11, %v459_v18, 0.0  ;;  %v4343_v18 = vld [vmem:[#allocation56_spill] sm:$0xff] }
 0x2fa   :  { %v972_v32 = vadd.f32 %v956_v60, %v812_v12  ;;  %v498_v48 = vadd.f32 %v482_v58, %v322_v14  ;;  %v495_v60 = vadd.f32 %v479_v47, %v319_v24  ;;  %v4352_v47 = vld [vmem:[#allocation76_spill] sm:$0xff]  ;;  %v4355_v24 = vld [vmem:[#allocation47_spill] sm:$0xff] }
 0x2fb   :  { %2486 = vset.pattern.permute.xlu1 %v4230_v59  ;;  %vm397_vm7 = vcmp.eq.s32.totalorder %v4352_v47, %v3330_v22 }
 0x2fc   :  { %861 = vperm.xlu1 %2486, %v3681_v34   ;;  %v1132_v19 = vadd.f32 %v1116_v1, %v972_v32  ;;  %v799_v1 = vsel %vm719_vm0, %v3836_v44, 0.0  ;;  %v655_v32 = vadd.f32 %v639_v29, %v495_v60 }
 0x2fd   :  { %v3867_v25 = vpop.permute.xlu1 %538 }
 0x2fe   :  { %v1292_v53 = vadd.f32 %v1276_v43, %v1132_v19  ;;  %v815_v43 = vadd.f32 %v799_v1, %v655_v32 }
 0x300   :  { %934 = vperm.xlu1 %2486, %v4313_v11  }
 0x302   :  { %v853_v63 = vpop.permute.xlu1 %852 }
 0x303   :  { %vm879_vm1 = vcmp.eq.s32.totalorder %v853_v63, %v3330_v22  ;;  %v480_v63 = vsel %vm400_vm3, %v3745_v5, 0.0 }
 0x304   :  { %2487 = vset.pattern.permute.xlu1 %v4262_v52 }
 0x305   :  { %1246 = vperm.xlu1 %2487, %v2952_v21  }
 0x307   :  { %v3885_v3 = vpop.permute.xlu1 %1082 }
 0x309   :  { %2488 = vset.pattern.permute.xlu1 %v4228_v61 }
 0x30a   :  { %626 = vperm.xlu1 %2488, %v2986_v26  }
 0x30c   :  { %v1395_v4 = vpop.permute.xlu1 %1394 }
 0x30d   :  { %v1436_v31 = vsel %vm1356_vm8, %v1395_v4, 0.0  ;;  %vm557_vm8 = vcmp.eq.s32.totalorder %v3631_v28, %v3330_v22 }
 0x30e   :  { %v1452_v17 = vadd.f32 %v1436_v31, %v1292_v53  ;;  %v2275_v56 = vpop.f32.mrf.mxu0  ;;  %2489 = vset.pattern.permute.xlu1 %v4230_v59  ;;  %v637_v41 = vsel %vm557_vm8, %v4355_v24, 0.0  ;;  %vm1038_vm8 = vcmp.eq.s32.totalorder %v3848_v0, %v3330_v22 }
 0x30f   :  { %938 = vperm.xlu1 %2489, %v4315_v55  }
 0x310   :  { %v1553_v61 = vpop.f32.mrf.mxu0  ;;  %2280 = vmatmul.mubr.f32.gmra.mxu0 %v1452_v17  ;;  %v4350_v17 = vld [vmem:[#allocation53_spill] sm:$0xff] }
 0x311   :  { %v1623_v62 = vpack.c.bf16 %v2275_v56, %v1553_v61  ;;  %v542_v37 = vpop.permute.xlu1 %541  ;;  %v640_v56 = vsel %vm560_vm4, %v4350_v17, 0.0  ;;  %v4361_v17 = vld [vmem:[#allocation38_spill] sm:$0xff] }
 0x312   :  { %vm562_vm14 = vcmp.eq.s32.totalorder %v542_v37, %v3330_v22  ;;  %vm398_vm3 = vcmp.eq.s32.totalorder %v4361_v17, %v3330_v22 }
 0x313   :  { %v642_v6 = vsel %vm562_vm14, %v4343_v18, 0.0  ;;  %2299 = vmatmul.mubr.msk.bf16.vlgmr.msra.gmra.mxu1 %vm1653_vm10, %v1623_v62  ;;  %2490 = vset.pattern.permute.xlu1 %v4232_v8  ;;  %v477_v18 = vsel %vm397_vm7, %v3566_v40, 0.0 }
 0x314   :  { %v658_v38 = vadd.f32 %v642_v6, %v498_v48  ;;  %1018 = vperm.xlu1 %2490, %v3653_v39   ;;  %v4353_v6 = vld [vmem:[#allocation12_spill] sm:$0xff] }
 0x315   :  { %vm221_vm9 = vcmp.eq.s32.totalorder %v4353_v6, %v3330_v22 }
 0x316   :  { %v856_v45 = vpop.permute.xlu1 %855  ;;  %v3915_v12 = vadd.f32 %v4347_v16, %v658_v38  ;;  %v4354_v38 = vld [vmem:[#allocation28_spill] sm:$0xff]  ;;  %v957_v16 = vsel %vm877_vm13, %v3794_v20, 0.0  ;;  %vm561_vm13 = vcmp.eq.s32.totalorder %v3867_v25, %v3330_v22 }
 0x317   :  { %vm880_vm5 = vcmp.eq.s32.totalorder %v856_v45, %v3330_v22  ;;  %v317_v57 = vsel %vm221_vm9, %v4354_v38, 0.0  ;;  %v4356_v45 = vld [vmem:[#allocation36_spill] sm:$0xff] }
 0x318   :  { %2491 = vset.pattern.permute.xlu1 %v4234_v50  ;;  %v493_v60 = vadd.f32 %v477_v18, %v317_v57  ;;  %vm717_vm12 = vcmp.eq.s32.totalorder %v4356_v45, %v3330_v22  ;;  %v4368_v57 = vld [vmem:[#allocation70_spill] sm:$0xff] }
 0x319   :  { %1332 = vperm.xlu1 %2491, %v3574_v7   ;;  %v4348_v7 = vld [vmem:[#allocation18_spill] sm:$0xff]  ;;  %v797_v40 = vsel %vm717_vm12, %v3717_v35, 0.0  ;;  %vm401_vm12 = vcmp.eq.s32.totalorder %v3805_v36, %v3330_v22 }
 0x31a   :  { %v927_v19 = vpop.permute.xlu1 %926  ;;  %vm224_vm2 = vcmp.eq.s32.totalorder %v4348_v7, %v3330_v22  ;;  %v653_v28 = vadd.f32 %v637_v41, %v493_v60  ;;  %v4369_v41 = vld [vmem:[#allocation50_spill] sm:$0xff] }
 0x31b   :  { %v959_v53 = vsel %vm879_vm1, %v927_v19, 0.0  ;;  %vm1198_vm7 = vcmp.eq.s32.totalorder %v4369_v41, %v3330_v22  ;;  %v4370_v60 = vld [vmem:[#allocation66_spill] sm:$0xff] }
 0x31c   :  { %v975_v4 = vadd.f32 %v959_v53, %v815_v43  ;;  %v813_v32 = vadd.f32 %v797_v40, %v653_v28  ;;  %v4357_v43 = vld [vmem:[#allocation42_spill] sm:$0xff] }
 0x31d   :  { %2492 = vset.pattern.permute.xlu1 %v4240_v54  ;;  %vm1197_vm14 = vcmp.eq.s32.totalorder %v4357_v43, %v3330_v22 }
 0x31e   :  { %707 = vperm.xlu1 %2492, %v3802_v15   ;;  %v3924_v33 = vadd.f32 %v3494_v2, %v975_v4  ;;  %v320_v2 = vsel %vm224_vm2, %v4349_v23, 0.0  ;;  %v973_v19 = vadd.f32 %v957_v16, %v813_v32  ;;  %v4358_v4 = vld [vmem:[#allocation75_spill] sm:$0xff]  ;;  %v4359_v23 = vld [vmem:[#allocation16_spill] sm:$0xff] }
 0x31f   :  { %v1239_v31 = vpop.permute.xlu1 %1238  ;;  %v496_v58 = vadd.f32 %v480_v63, %v320_v2  ;;  %vm227_vm1 = vcmp.eq.s32.totalorder %v4359_v23, %v3330_v22  ;;  %v4360_v2 = vld [vmem:[#allocation17_spill] sm:$0xff] }
 0x320   :  { %v1277_v35 = vsel %vm1197_vm14, %v1239_v31, 0.0  ;;  %v1133_v7 = vadd.f32 %v4358_v4, %v973_v19  ;;  %vm222_vm2 = vcmp.eq.s32.totalorder %v4360_v2, %v3330_v22  ;;  %v4373_v4 = vld [vmem:[#allocation54_spill] sm:$0xff]  ;;  %v4375_v23 = vld [vmem:[#allocation37_spill] sm:$0xff] }
 0x321   :  { %v656_v61 = vadd.f32 %v640_v56, %v496_v58  ;;  %v4362_v56 = vld [vmem:[#allocation21_spill] sm:$0xff] }
 0x322   :  { %2494 = vset.pattern.permute.xlu1 %v4232_v8  ;;  %v1293_v51 = vadd.f32 %v1277_v35, %v1133_v7  ;;  %vm558_vm4 = vcmp.eq.s32.totalorder %v4362_v56, %v3330_v22  ;;  %v641_v7 = vsel %vm561_vm13, %v4373_v4, 0.0 }
 0x323   :  { %1021 = vperm.xlu1 %2494, %v3681_v34   ;;  %v816_v42 = vadd.f32 %v4351_v46, %v656_v61 }
 0x324   :  { %v385_v44 = vpop.permute.xlu1 %384 }
 0x325   :  { %vm403_vm6 = vcmp.eq.s32.totalorder %v385_v44, %v3330_v22 }
 0x327   :  { %1094 = vperm.xlu1 %2494, %v4313_v11  }
 0x329   :  { %v699_v34 = vpop.permute.xlu1 %698 }
 0x32a   :  { %vm721_vm11 = vcmp.eq.s32.totalorder %v699_v34, %v3330_v22  ;;  %v4364_v34 = vld [vmem:[#allocation59_spill] sm:$0xff] }
 0x32b   :  { %2495 = vset.pattern.permute.xlu1 %v4234_v50  ;;  %v478_v61 = vsel %vm398_vm3, %v4364_v34, 0.0 }
 0x32c   :  { %1406 = vperm.xlu1 %2495, %v2952_v21  }
 0x32e   :  { %v931_v9 = vpop.permute.xlu1 %930 }
 0x32f   :  { %v960_v14 = vsel %vm880_vm5, %v931_v9, 0.0  ;;  %v4365_v9 = vld [vmem:[#allocation29_spill] sm:$0xff] }
 0x330   :  { %v3942_v5 = vadd.f32 %v960_v14, %v816_v42  ;;  %2496 = vset.pattern.permute.xlu1 %v4240_v54  ;;  %v318_v14 = vsel %vm222_vm2, %v4365_v9, 0.0  ;;  %v4376_v9 = vld [vmem:[#allocation27_spill] sm:$0xff] }
 0x331   :  { %786 = vperm.xlu1 %2496, %v2986_v26   ;;  %v494_v18 = vadd.f32 %v478_v61, %v318_v14  ;;  %vm1199_vm3 = vcmp.eq.s32.totalorder %v4376_v9, %v3330_v22 }
 0x333   :  { %v3946_v62 = vpop.permute.xlu1 %1242 }
 0x335   :  { %2498 = vset.pattern.permute.xlu1 %v4232_v8 }
 0x336   :  { %1098 = vperm.xlu1 %2498, %v4315_v55  }
 0x338   :  { %v1327_v37 = vpop.permute.xlu1 %1326 }
 0x339   :  { %vm1357_vm15 = vcmp.eq.s32.totalorder %v1327_v37, %v3330_v22  ;;  %v4366_v37 = vld [vmem:[#allocation49_spill] sm:$0xff] }
 0x33a   :  { %2499 = vset.pattern.permute.xlu1 %v4262_v52 }
 0x33b   :  { %1178 = vperm.xlu1 %2499, %v3653_v39  }
 0x33d   :  { %v388_v21 = vpop.permute.xlu1 %387 }
 0x33e   :  { %vm404_vm0 = vcmp.eq.s32.totalorder %v388_v21, %v3330_v22  ;;  %v638_v21 = vsel %vm558_vm4, %v4366_v37, 0.0 }
 0x33f   :  { %2500 = vset.pattern.permute.xlu1 %v4230_v59 }
 0x340   :  { %867 = vperm.xlu1 %2500, %v3802_v15  }
 0x341   :  { %v463_v54 = vpop.permute.xlu1 %462 }
 0x342   :  { %v483_v48 = vsel %vm403_vm6, %v463_v54, 0.0  ;;  %v4367_v54 = vld [vmem:[#allocation58_spill] sm:$0xff]  ;;  %vm878_vm6 = vcmp.eq.s32.totalorder %v3790_v10, %v3330_v22 }
 0x344   :  { %942 = vperm.xlu1 %2500, %v2979_v27  }
 0x346   :  { %v775_v30 = vpop.permute.xlu1 %774 }
 0x347   :  { %v3966_v29 = vsel %vm721_vm11, %v775_v30, 0.0  ;;  %v654_v30 = vadd.f32 %v638_v21, %v494_v18 }
 0x348   :  { %2501 = vset.pattern.permute.xlu1 %v4262_v52 }
 0x349   :  { %1254 = vperm.xlu1 %2501, %v4313_v11   ;;  %v814_v45 = vadd.f32 %v4370_v60, %v654_v30 }
 0x34b   :  { %v1016_v1 = vpop.permute.xlu1 %1015 }
 0x34c   :  { %vm1040_vm9 = vcmp.eq.s32.totalorder %v1016_v1, %v3330_v22 }
 0x34d   :  { %2502 = vset.pattern.permute.xlu1 %v4230_v59 }
 0x34e   :  { %946 = vperm.xlu1 %2502, %v2986_v26  }
 0x350   :  { %v1330_v53 = vpop.permute.xlu1 %1329 }
 0x351   :  { %vm1358_vm11 = vcmp.eq.s32.totalorder %v1330_v53, %v3330_v22  ;;  %v4371_v53 = vld [vmem:[#allocation15_spill] sm:$0xff] }
 0x352   :  { %2503 = vset.pattern.permute.xlu1 %v4262_v52  ;;  %vm225_vm14 = vcmp.eq.s32.totalorder %v4371_v53, %v3330_v22 }
 0x353   :  { %1258 = vperm.xlu1 %2503, %v4315_v55  }
 0x354   :  { %v1399_v20 = vpop.permute.xlu1 %1398 }
 0x355   :  { %v1437_v44 = vsel %vm1357_vm15, %v1399_v20, 0.0 }
 0x356   :  { %v1453_v59 = vadd.f32 %v1437_v44, %v1293_v51 }
 0x357   :  { %2504 = vset.pattern.permute.xlu1 %v4234_v50 }
 0x358   :  { %1338 = vperm.xlu1 %2504, %v3653_v39   ;;  %2282 = vmatprep.mubr.f32.mxu0 %v1453_v59  ;;  %v4363_v39 = vld [vmem:[#allocation35_spill] sm:$0xff] }
 0x359   :  { %v467_v31 = vpop.permute.xlu1 %466  ;;  %v323_v58 = vsel %vm227_vm1, %v4363_v39, 0.0 }
 0x35a   :  { %v3987_v63 = vsel %vm404_vm0, %v467_v31, 0.0  ;;  %v499_v42 = vadd.f32 %v483_v48, %v323_v58  ;;  %v958_v48 = vsel %vm878_vm6, %v3812_v49, 0.0  ;;  %v1278_v49 = vsel %vm1198_vm7, %v3946_v62, 0.0  ;;  %v4374_v31 = vld [vmem:[#allocation20_spill] sm:$0xff] }
 0x35b   :  { %v974_v10 = vadd.f32 %v958_v48, %v814_v45  ;;  %vm228_vm0 = vcmp.eq.s32.totalorder %v4374_v31, %v3330_v22 }
 0x35c   :  { %2506 = vset.pattern.permute.xlu1 %v4232_v8  ;;  %v324_v2 = vsel %vm228_vm0, %v4375_v23, 0.0 }
 0x35d   :  { %1102 = vperm.xlu1 %2506, %v2979_v27   ;;  %v500_v17 = vadd.f32 %v3987_v63, %v324_v2  ;;  %v4377_v63 = vld [vmem:[#allocation14_spill] sm:$0xff] }
 0x35e   :  { %v545_v46 = vpop.permute.xlu1 %544  ;;  %vm1200_vm4 = vcmp.eq.s32.totalorder %v4377_v63, %v3330_v22  ;;  %v4383_v2 = vld [vmem:[#allocation78_spill] sm:$0xff] }
 0x35f   :  { %vm563_vm5 = vcmp.eq.s32.totalorder %v545_v46, %v3330_v22 }
 0x360   :  { %v643_v47 = vsel %vm563_vm5, %v4367_v54, 0.0 }
 0x361   :  { %v659_v6 = vadd.f32 %v643_v47, %v499_v42  ;;  %2507 = vset.pattern.permute.xlu1 %v4234_v50  ;;  %v1336_v42 = vpop.permute.xlu0 %1335  ;;  %v4378_v47 = vld [vmem:[#allocation40_spill] sm:$0xff] }
 0x362   :  { %1414 = vperm.xlu1 %2507, %v4313_v11   ;;  %v1118_v11 = vsel %vm1038_vm8, %v3885_v3, 0.0  ;;  %v1280_v18 = vsel %vm1200_vm4, %v4378_v47, 0.0  ;;  %vm1360_vm6 = vcmp.eq.s32.totalorder %v1336_v42, %v3330_v22 }
 0x363   :  { %v859_v38 = vpop.permute.xlu1 %858  ;;  %v4008_v24 = vadd.f32 %v4368_v57, %v659_v6  ;;  %v1134_v16 = vadd.f32 %v1118_v11, %v974_v10 }
 0x364   :  { %vm881_vm15 = vcmp.eq.s32.totalorder %v859_v38, %v3330_v22 }
 0x365   :  { %v1294_v32 = vadd.f32 %v1278_v49, %v1134_v16  ;;  %v4379_v16 = vld [vmem:[#allocation71_spill] sm:$0xff] }
 0x366   :  { %2508 = vset.pattern.permute.xlu1 %v4232_v8 }
 0x367   :  { %1106 = vperm.xlu1 %2508, %v2986_v26  }
 0x368   :  { %v1091_v40 = vpop.permute.xlu1 %1090 }
 0x369   :  { %v1120_v28 = vsel %vm1040_vm9, %v1091_v40, 0.0 }
 0x36a   :  { %v1136_v8 = vadd.f32 %v1120_v28, %v3942_v5 }
 0x36b   :  { %2509 = vset.pattern.permute.xlu1 %v4234_v50 }
 0x36c   :  { %1418 = vperm.xlu1 %2509, %v4315_v55   ;;  %v481_v55 = vsel %vm401_vm12, %v3825_v13, 0.0  ;;  %v1296_v6 = vadd.f32 %v1280_v18, %v1136_v8 }
 0x36d   :  { %v1403_v0 = vpop.permute.xlu1 %1402 }
 0x36e   :  { %v1438_v43 = vsel %vm1358_vm11, %v1403_v0, 0.0  ;;  %vm883_vm11 = vcmp.eq.s32.totalorder %v4379_v16, %v3330_v22 }
 0x36f   :  { %v1454_v3 = vadd.f32 %v1438_v43, %v1294_v32  ;;  %v2278_v19 = vpop.f32.mrf.mxu0 }
 0x370   :  { %2510 = vset.pattern.permute.xlu1 %v4262_v52  ;;  %v4372_v52 = vld [vmem:[#allocation33_spill] sm:$0xff] }
 0x371   :  { %v1563_v1 = vpop.f32.mrf.mxu0  ;;  %1187 = vperm.xlu1 %2510, %v3802_v15   ;;  %2283 = vmatmul.mubr.f32.gmra.mxu0 %v1454_v3  ;;  %v321_v35 = vsel %vm225_vm14, %v4372_v52, 0.0 }
 0x372   :  { %v1624_v62 = vpack.c.bf16 %v2278_v19, %v1563_v1  ;;  %v548_v5 = vpop.permute.xlu1 %547  ;;  %v497_v51 = vadd.f32 %v481_v55, %v321_v35  ;;  %v4380_v1 = vld [vmem:[#allocation30_spill] sm:$0xff] }
 0x373   :  { %vm564_vm1 = vcmp.eq.s32.totalorder %v548_v5, %v3330_v22  ;;  %vm1202_vm12 = vcmp.eq.s32.totalorder %v4380_v1, %v3330_v22 }
 0x374   :  { %2302 = vmatprep.mubr.msk.bf16.mxu1 %vm1653_vm10, %v1624_v62  ;;  %v657_v44 = vadd.f32 %v641_v7, %v497_v51  ;;  %v4381_v7 = vld [vmem:[#allocation77_spill] sm:$0xff] }
 0x375   :  { %1266 = vperm.xlu1 %2510, %v2986_v26   ;;  %vm1043_vm13 = vcmp.eq.s32.totalorder %v4381_v7, %v3330_v22 }
 0x376   :  { %v817_v36 = vadd.f32 %v3966_v29, %v657_v44 }
 0x377   :  { %v862_v20 = vpop.permute.xlu1 %861 }
 0x378   :  { %vm882_vm2 = vcmp.eq.s32.totalorder %v862_v20, %v3330_v22 }
 0x379   :  { %2512 = vset.pattern.permute.xlu1 %v4234_v50 }
 0x37a   :  { %1347 = vperm.xlu1 %2512, %v3802_v15  }
 0x37b   :  { %v935_v13 = vpop.permute.xlu1 %934 }
 0x37c   :  { %v961_v25 = vsel %vm881_vm15, %v935_v13, 0.0 }
 0x37d   :  { %v977_v59 = vadd.f32 %v961_v25, %v817_v36  ;;  %v4382_v36 = vld [vmem:[#allocation5_spill] sm:$0xff] }
 0x37e   :  { %1422 = vperm.xlu1 %2512, %v2979_v27  }
 0x380   :  { %v1247_v26 = vpop.permute.xlu1 %1246 }
 0x381   :  { %v1279_v21 = vsel %vm1199_vm3, %v1247_v26, 0.0 }
 0x382   :  { %v1295_v30 = vadd.f32 %v1279_v21, %v3924_v33 }
 0x385   :  { %v627_v50 = vpop.permute.xlu1 %626 }
 0x386   :  { %v644_v15 = vsel %vm564_vm1, %v627_v50, 0.0  ;;  %vm1044_vm1 = vcmp.eq.s32.totalorder %v4383_v2, %v3330_v22  ;;  %v2517_v2 = vld [vmem:[%s4186_s7 + $0x8] sm:$0xff]  }
 0x387   :  { %v660_v29 = vadd.f32 %v644_v15, %v500_v17  ;;  %2334 = vmatprep.subr.bf16.mxu0 %v2517_v2 }
 0x388   :  { %2335 = vmatpush3.bf16.msra.mxu0 %v2517_v2 }
 0x38a   :  { %v939_v56 = vpop.permute.xlu1 %938 }
 0x38b   :  { %v962_v39 = vsel %vm882_vm2, %v939_v56, 0.0 }
 0x38c   :  { %v978_v58 = vadd.f32 %v962_v39, %v3915_v12  ;;  %v1411_v12 = vpop.permute.xlu0 %1410 }
 0x38d   :  { %v1440_v48 = vsel %vm1360_vm6, %v1411_v12, 0.0 }
 0x38e   :  { %v1456_v60 = vadd.f32 %v1440_v48, %v1296_v6 }
 0x38f   :  { %v1019_v27 = vpop.permute.xlu1 %1018 }
 0x390   :  { %vm1041_vm5 = vcmp.eq.s32.totalorder %v1019_v27, %v3330_v22 }
 0x394   :  { %v1333_v34 = vpop.permute.xlu1 %1332 }
 0x395   :  { %vm1359_vm7 = vcmp.eq.s32.totalorder %v1333_v34, %v3330_v22 }
 0x399   :  { %v708_v61 = vpop.permute.xlu1 %707 }
 0x39a   :  { %vm724_vm8 = vcmp.eq.s32.totalorder %v708_v61, %v3330_v22 }
 0x39e   :  { %v1022_v46 = vpop.permute.xlu1 %1021 }
 0x39f   :  { %vm1042_vm9 = vcmp.eq.s32.totalorder %v1022_v46, %v3330_v22 }
 0x3a2   :  { %v1095_v14 = vpop.permute.xlu1 %1094 }
 0x3a3   :  { %v1121_v37 = vsel %vm1041_vm5, %v1095_v14, 0.0 }
 0x3a4   :  { %v1137_v54 = vadd.f32 %v1121_v37, %v977_v59 }
 0x3a7   :  { %v1407_v38 = vpop.permute.xlu1 %1406 }
 0x3a8   :  { %v1439_v57 = vsel %vm1359_vm7, %v1407_v38, 0.0  ;;  %v2515_v38 = vld [vmem:[%s4184_s5 + $0x8] sm:$0xff]  }
 0x3a9   :  { %v1455_v41 = vadd.f32 %v1439_v57, %v1295_v30  ;;  %2314 = vmatprep.subr.bf16.mxu1 %v2515_v38 }
 0x3aa   :  { %2315 = vmatpush3.bf16.msra.mxu1 %v2515_v38 }
 0x3ab   :  { %2285 = vmatprep.mubr.f32.mxu0 %v1455_v41 }
 0x3ac   :  { %2286 = vmatmul.mubr.f32.gmra.mxu0 %v1456_v60  ;;  %v787_v45 = vpop.permute.xlu1 %786 }
 0x3ad   :  { %v804_v11 = vsel %vm724_vm8, %v787_v45, 0.0 }
 0x3ae   :  { %v820_v40 = vadd.f32 %v804_v11, %v660_v29  ;;  %v1342_v29 = vpop.permute.xlu0 %1341 }
 0x3af   :  { %vm1362_vm2 = vcmp.eq.s32.totalorder %v1342_v29, %v3330_v22 }
 0x3b1   :  { %v1099_v10 = vpop.permute.xlu1 %1098 }
 0x3b2   :  { %v1122_v28 = vsel %vm1042_vm9, %v1099_v10, 0.0  ;;  %v1345_v46 = vpop.permute.xlu0 %1344 }
 0x3b3   :  { %v1138_v49 = vadd.f32 %v1122_v28, %v978_v58  ;;  %vm1363_vm5 = vcmp.eq.s32.totalorder %v1345_v46, %v3330_v22 }
 0x3b6   :  { %v1179_v33 = vpop.permute.xlu1 %1178  ;;  %v1427_v63 = vpop.permute.xlu0 %1426 }
 0x3b7   :  { %vm1201_vm14 = vcmp.eq.s32.totalorder %v1179_v33, %v3330_v22  ;;  %v4092_v33 = vld [vmem:[%s4183_s4] ss:$0 sm:$0xff] }
 0x3bb   :  { %v868_v8 = vpop.permute.xlu1 %867 }
 0x3bc   :  { %vm884_vm0 = vcmp.eq.s32.totalorder %v868_v8, %v3330_v22 }
 0x3bf   :  { %v943_v32 = vpop.permute.xlu1 %942 }
 0x3c0   :  { %v963_v0 = vsel %vm883_vm11, %v943_v32, 0.0 }
 0x3c1   :  { %v979_v43 = vadd.f32 %v963_v0, %v4008_v24 }
 0x3c4   :  { %v1255_v3 = vpop.permute.xlu1 %1254 }
 0x3c5   :  { %v1281_v20 = vsel %vm1201_vm14, %v1255_v3, 0.0 }
 0x3c6   :  { %v1297_v25 = vadd.f32 %v1281_v20, %v1137_v54 }
 0x3c9   :  { %v947_v19 = vpop.permute.xlu1 %946 }
 0x3ca   :  { %v964_v31 = vsel %vm884_vm0, %v947_v19, 0.0 }
 0x3cb   :  { %v980_v17 = vadd.f32 %v964_v31, %v820_v40 }
 0x3ce   :  { %v1259_v62 = vpop.permute.xlu1 %1258 }
 0x3cf   :  { %v1282_v5 = vsel %vm1202_vm12, %v1259_v62, 0.0 }
 0x3d0   :  { %v1298_v55 = vadd.f32 %v1282_v5, %v1138_v49  ;;  %v2281_v53 = vpop.f32.mrf.mxu0 }
 0x3d2   :  { %v1573_v52 = vpop.f32.mrf.mxu0 }
 0x3d3   :  { %v1625_v35 = vpack.c.bf16 %v2281_v53, %v1573_v52  ;;  %v1339_v4 = vpop.permute.xlu1 %1338  ;;  %v2300_v60 = vpop.f32.mrf.mxu1 }
 0x3d4   :  { %vm1361_vm15 = vcmp.eq.s32.totalorder %v1339_v4, %v3330_v22  ;;  %v1721_v62 = vadd.f32 %v2300_v60, %v4092_v33 }
 0x3d5   :  { %2303 = vmatmul.mubr.msk.bf16.gmra.mxu1 %vm1653_vm10, %v1625_v35  ;;  %v1712_v45 = vpop.f32.mrf.mxu1 }
 0x3d7   :  { %v2301_v11 = vpop.f32.mrf.mxu1 }
 0x3d8   :  { %v1103_v51 = vpop.permute.xlu1 %1102  ;;  %v1724_v19 = vadd.f32 %v2301_v11, %v4092_v33 }
 0x3d9   :  { %v1123_v24 = vsel %vm1043_vm13, %v1103_v51, 0.0  ;;  %v1715_v40 = vpop.f32.mrf.mxu1 }
 0x3da   :  { %v1139_v44 = vadd.f32 %v1123_v24, %v979_v43  ;;  %v1716_v16 = vadd.f32 %v4092_v33, %v1715_v40  ;;  %v1713_v43 = vadd.f32 %v4092_v33, %v1712_v45 }
 0x3dc   :  { %v1299_v13 = vadd.f32 %v4382_v36, %v1139_v44  ;;  %2551 = vtanh.f32 %v1716_v16 }
 0x3dd   :  { %v1415_v59 = vpop.permute.xlu1 %1414  ;;  %2553 = vtanh.f32 %v1713_v43 }
 0x3de   :  { %v1441_v26 = vsel %vm1361_vm15, %v1415_v59, 0.0  ;;  %2555 = vtanh.f32 %v1724_v19 }
 0x3df   :  { %v1457_v23 = vadd.f32 %v1441_v26, %v1297_v25 }
 0x3e1   :  { %2288 = vmatprep.mubr.f32.mxu0 %v1457_v23 }
 0x3e2   :  { %v1107_v50 = vpop.permute.xlu1 %1106 }
 0x3e3   :  { %v1124_v15 = vsel %vm1044_vm1, %v1107_v50, 0.0 }
 0x3e4   :  { %v1140_v56 = vadd.f32 %v1124_v15, %v980_v17  ;;  %v2518_v17 = vld [vmem:[%s4186_s7] sm:$0xff]  }
 0x3e5   :  { %2336 = vmatprep.subr.bf16.mxu0 %v2518_v17 }
 0x3e6   :  { %2337 = vmatpush3.bf16.msra.mxu0 %v2518_v17 }
 0x3e7   :  { %v1419_v39 = vpop.permute.xlu1 %1418 }
 0x3e8   :  { %v1442_v58 = vsel %vm1362_vm2, %v1419_v39, 0.0 }
 0x3e9   :  { %v1458_v27 = vadd.f32 %v1442_v58, %v1298_v55  ;;  %v2552_v52 = vpop.eup %2551 }
 0x3ea   :  { %v2554_v7 = vpop.eup %2553 }
 0x3eb   :  { %2289 = vmatmul.mubr.f32.gmra.mxu0 %v1458_v27  ;;  %v1791_v24 = vpack.c.bf16 %v2552_v52, %v2554_v7  ;;  %v2556_v20 = vpop.eup %2555 }
 0x3ec   :  { %v1188_v34 = vpop.permute.xlu1 %1187 }
 0x3ed   :  { %vm1204_vm3 = vcmp.eq.s32.totalorder %v1188_v34, %v3330_v22 }
 0x3f0   :  { %v1267_v61 = vpop.permute.xlu1 %1266 }
 0x3f1   :  { %v1284_v9 = vsel %vm1204_vm3, %v1267_v61, 0.0 }
 0x3f2   :  { %v1300_v21 = vadd.f32 %v1284_v9, %v1140_v56 }
 0x3f5   :  { %v1348_v42 = vpop.permute.xlu1 %1347 }
 0x3f6   :  { %vm1364_vm4 = vcmp.eq.s32.totalorder %v1348_v42, %v3330_v22  ;;  %v2516_v22 = vld [vmem:[%s4184_s5] sm:$0xff]  }
 0x3f7   :  { %v1444_v14 = vsel %vm1364_vm4, %v1427_v63, 0.0  ;;  %2316 = vmatprep.subr.bf16.mxu1 %v2516_v22 }
 0x3f8   :  { %v1460_v18 = vadd.f32 %v1444_v14, %v1300_v21  ;;  %2317 = vmatpush3.bf16.msra.mxu1 %v2516_v22 }
 0x3f9   :  { %v1423_v37 = vpop.permute.xlu1 %1422  ;;  %2354 = vmatprep.subr.bf16.mxu1 %v2517_v2 }
 0x3fa   :  { %v1443_v54 = vsel %vm1363_vm5, %v1423_v37, 0.0 }
 0x3fb   :  { %v1459_v47 = vadd.f32 %v1443_v54, %v1299_v13 }
 0x3fd   :  { %2291 = vmatprep.mubr.f32.mxu0 %v1459_v47 }
 0x3fe   :  { %2292 = vmatmul.mubr.f32.gmra.mxu0 %v1460_v18 }
 0x431   :  { %v2284_v12 = vpop.f32.mrf.mxu0 }
 0x433   :  { %v1583_v6 = vpop.f32.mrf.mxu0 }
 0x434   :  { %v1626_v30 = vpack.c.bf16 %v2284_v12, %v1583_v6 }
 0x436   :  { %2306 = vmatprep.mubr.msk.bf16.mxu1 %vm1653_vm10, %v1626_v30 }
 0x46c   :  { %v2287_v57 = vpop.f32.mrf.mxu0 }
 0x46e   :  { %v1593_v48 = vpop.f32.mrf.mxu0 }
 0x46f   :  { %v1627_v41 = vpack.c.bf16 %v2287_v57, %v1593_v48  ;;  %v4127_v57 = vld [vmem:[%s4185_s6] ss:$0 sm:$0xff] }
 0x471   :  { %2307 = vmatmul.mubr.msk.bf16.gmra.mxu1 %vm1653_vm10, %v1627_v41 }
 0x495   :  { %v2304_v10 = vpop.f32.mrf.mxu1 }
 0x496   :  { %v1737_v35 = vadd.f32 %v2304_v10, %v4092_v33 }
 0x497   :  { %v1728_v28 = vpop.f32.mrf.mxu1 }
 0x498   :  { %v1729_v5 = vadd.f32 %v4092_v33, %v1728_v28 }
 0x499   :  { %v2305_v0 = vpop.f32.mrf.mxu1 }
 0x49a   :  { %v1740_v55 = vadd.f32 %v2305_v0, %v4092_v33 }
 0x49b   :  { %v1731_v3 = vpop.f32.mrf.mxu1 }
 0x49c   :  { %v1732_v1 = vadd.f32 %v4092_v33, %v1731_v3 }
 0x49e   :  { %2557 = vtanh.f32 %v1732_v1 }
 0x49f   :  { %2559 = vtanh.f32 %v1721_v62 }
 0x4a0   :  { %2561 = vtanh.f32 %v1729_v5 }
 0x4a1   :  { %2563 = vtanh.f32 %v1740_v55 }
 0x4a2   :  { %2565 = vtanh.f32 %v1737_v35 }
 0x4ab   :  { %v2290_v49 = vpop.f32.mrf.mxu0  ;;  %v2558_v44 = vpop.eup %2557 }
 0x4ac   :  { %v2560_v36 = vpop.eup %2559 }
 0x4ad   :  { %v1603_v8 = vpop.f32.mrf.mxu0  ;;  %v2562_v13 = vpop.eup %2561  ;;  %v1792_v25 = vpack.c.bf16 %v2556_v20, %v2560_v36 }
 0x4ae   :  { %v1628_v32 = vpack.c.bf16 %v2290_v49, %v1603_v8  ;;  %v1793_v59 = vpack.c.bf16 %v2558_v44, %v2562_v13  ;;  %v2564_v26 = vpop.eup %2563 }
 0x4af   :  { %v2566_v31 = vpop.eup %2565 }
 0x4b0   :  { %2310 = vmatprep.mubr.msk.bf16.mxu1 %vm1653_vm10, %v1628_v32  ;;  %v1794_v23 = vpack.c.bf16 %v2564_v26, %v2566_v31 }
 0x4be   :  { %v2293_v53 = vpop.f32.mrf.mxu0 }
 0x4c0   :  { %v1613_v4 = vpop.f32.mrf.mxu0 }
 0x4c1   :  { %v1629_v51 = vpack.c.bf16 %v2293_v53, %v1613_v4 }
 0x4c3   :  { %2311 = vmatmul.mubr.msk.bf16.gmra.mxu1 %vm1653_vm10, %v1629_v51 }
 0x4c4   :  { %2318 = vmatprep.mubr.msk.bf16.mxu1 %vm1653_vm10, %v1791_v24 }
 0x4cb   :  { %2319 = vmatmul.mubr.msk.bf16.vlgmr.msra.gmra.mxu1 %vm1653_vm10, %v1792_v25 }
 0x4cc   :  { %2322 = vmatprep.mubr.msk.bf16.mxu1 %vm1653_vm10, %v1793_v59  ;;  %2356 = vmatpush3.bf16.msra.mxu1 %v2517_v2 }
 0x4cd   :  { %2355 = vmatprep.subr.bf16.mxu1 %v2518_v17 }
 0x4d0   :  { %2357 = vmatpush3.bf16.msra.mxu1 %v2518_v17 }
 0x4d3   :  { %2323 = vmatmul.mubr.msk.bf16.gmra.mxu1 %vm1653_vm10, %v1794_v23 }
 0x531   :  { %v2308_v50 = vpop.f32.mrf.mxu1 }
 0x532   :  { %v1753_v58 = vadd.f32 %v2308_v50, %v4092_v33 }
 0x533   :  { %v1744_v15 = vpop.f32.mrf.mxu1 }
 0x534   :  { %v1745_v29 = vadd.f32 %v4092_v33, %v1744_v15 }
 0x535   :  { %v2309_v56 = vpop.f32.mrf.mxu1 }
 0x536   :  { %v1756_v39 = vadd.f32 %v2309_v56, %v4092_v33  ;;  %2567 = vtanh.f32 %v1745_v29 }
 0x537   :  { %v1747_v27 = vpop.f32.mrf.mxu1 }
 0x538   :  { %v1748_v34 = vadd.f32 %v4092_v33, %v1747_v27  ;;  %2569 = vtanh.f32 %v1756_v39 }
 0x53a   :  { %2571 = vtanh.f32 %v1748_v34  ;;  %v4152_v34 = vld [vmem:[%s4187_s8] ss:$0 sm:$0xff]  ;;  %s2625_s8 = smov [#allocation2]  }
 0x53b   :  { %2573 = vtanh.f32 %v1753_v58  ;;  %s2132_s29 = sshll.u32 %s2625_s8, 4  ;;  %s2133_s29 = int_to_ptr.vmem [resolvable:$true] %s2132_s29 }
 0x53c   :  { %s2595_s30 = scalar_lea.vmem %s2133_s29, 2048  ;;  %p2600_p1 = scmp.lt.s32.totalorder %s2133_s29, %s2133_s29 }
 0x53d   :  { %p2596_p0 = scmp.ne.s32.totalorder %s2133_s29, %s2595_s30  ;;  %p2601_p2 = scmp.lt.s32.totalorder %s2595_s30, %s2595_s30 }
 0x53f   :  { %p2602_p3 = por %p2601_p2, %p2600_p1 }
 0x541   :  { %p2603_p4 = pnand %p2602_p3, %p2596_p0 }
 0x543   :  { %v2568_v61 = vpop.eup %2567 }
 0x545   :  { %v2570_v46 = vpop.eup %2569 }
 0x547   :  { %v2572_v42 = vpop.eup %2571 }
 0x548   :  { %v2574_v9 = vpop.eup %2573  ;;  %v1795_v63 = vpack.c.bf16 %v2572_v42, %v2568_v61 }
 0x549   :  { %v1796_v14 = vpack.c.bf16 %v2570_v46, %v2574_v9 }
 0x54a   :  { %2326 = vmatprep.mubr.msk.bf16.mxu1 %vm1653_vm10, %v1795_v63 }
 0x54b   :  { %2327 = vmatmul.mubr.msk.bf16.gmra.mxu1 %vm1653_vm10, %v1796_v14 }
 0x583   :  { %v2312_v37 = vpop.f32.mrf.mxu1 }
 0x584   :  { %v1769_v12 = vadd.f32 %v2312_v37, %v4092_v33 }
 0x585   :  { %v1760_v21 = vpop.f32.mrf.mxu1 }
 0x586   :  { %v1761_v54 = vadd.f32 %v4092_v33, %v1760_v21 }
 0x587   :  { %v2313_v47 = vpop.f32.mrf.mxu1 }
 0x588   :  { %v1772_v18 = vadd.f32 %v2313_v47, %v4092_v33  ;;  %2575 = vtanh.f32 %v1761_v54 }
 0x589   :  { %v1763_v6 = vpop.f32.mrf.mxu1 }
 0x58a   :  { %v1764_v30 = vadd.f32 %v4092_v33, %v1763_v6  ;;  %2577 = vtanh.f32 %v1772_v18 }
 0x58b   :  { %v2320_v38 = vpop.f32.mrf.mxu1 }
 0x58c   :  { %2579 = vtanh.f32 %v1764_v30  ;;  %v1889_v45 = vadd.f32 %v2320_v38, %v4127_v57 }
 0x58d   :  { %2581 = vtanh.f32 %v1769_v12  ;;  %v1880_v22 = vpop.f32.mrf.mxu1 }
 0x58e   :  { %v1881_v41 = vadd.f32 %v4127_v57, %v1880_v22  ;;  %v1945_v8 = vmax.f32 %v1889_v45, 0.0 }
 0x58f   :  { %v2321_v48 = vpop.f32.mrf.mxu1 }
 0x590   :  { %v1892_v60 = vadd.f32 %v2321_v48, %v4127_v57  ;;  %v1943_v49 = vmax.f32 %v1881_v41, 0.0 }
 0x591   :  { %v1883_v11 = vpop.f32.mrf.mxu1 }
 0x592   :  { %v1884_v40 = vadd.f32 %v4127_v57, %v1883_v11  ;;  %v1946_v10 = vmax.f32 %v1892_v60, 0.0 }
 0x593   :  { %v2324_v28 = vpop.f32.mrf.mxu1 }
 0x594   :  { %v1944_v33 = vmax.f32 %v1884_v40, 0.0  ;;  %v1960_v43 = vpack.c.bf16 %v1946_v10, %v1945_v8  ;;  %v1905_v55 = vadd.f32 %v2324_v28, %v4127_v57 }
 0x595   :  { %v1896_v16 = vpop.f32.mrf.mxu1  ;;  %v2576_v0 = vpop.eup %2575 }
 0x596   :  { %v1959_v32 = vpack.c.bf16 %v1944_v33, %v1943_v49  ;;  %v1897_v1 = vadd.f32 %v4127_v57, %v1896_v16  ;;  %v1949_v44 = vmax.f32 %v1905_v55, 0.0 }
 0x597   :  { %v2325_v3 = vpop.f32.mrf.mxu1  ;;  %v2578_v19 = vpop.eup %2577 }
 0x598   :  { %v1908_v62 = vadd.f32 %v2325_v3, %v4127_v57  ;;  %2338 = vmatprep.mubr.msk.bf16.mxu0 %vm1653_vm10, %v1959_v32  ;;  %v1947_v24 = vmax.f32 %v1897_v1, 0.0 }
 0x599   :  { %v2580_v5 = vpop.eup %2579  ;;  %v1899_v53 = vpop.f32.mrf.mxu1  ;;  %2339 = vmatmul.mubr.msk.bf16.vlgmr.msra.gmra.mxu0 %vm1653_vm10, %v1960_v43 }
 0x59a   :  { %v2582_v52 = vpop.eup %2581  ;;  %v1900_v35 = vadd.f32 %v4127_v57, %v1899_v53  ;;  %v1797_v4 = vpack.c.bf16 %v2580_v5, %v2576_v0  ;;  %v1950_v7 = vmax.f32 %v1908_v62, 0.0 }
 0x59b   :  { %v1798_v51 = vpack.c.bf16 %v2578_v19, %v2582_v52 }
 0x59c   :  { %v1948_v20 = vmax.f32 %v1900_v35, 0.0  ;;  %2330 = vmatprep.mubr.msk.bf16.mxu1 %vm1653_vm10, %v1797_v4  ;;  %v1962_v13 = vpack.c.bf16 %v1950_v7, %v1949_v44 }
 0x59d   :  { %2331 = vmatmul.mubr.msk.bf16.gmra.mxu1 %vm1653_vm10, %v1798_v51 }
 0x59e   :  { %v1961_v36 = vpack.c.bf16 %v1948_v20, %v1947_v24 }
 0x5a0   :  { %2342 = vmatprep.mubr.msk.bf16.mxu0 %vm1653_vm10, %v1961_v36 }
 0x5a1   :  { %2343 = vmatmul.mubr.msk.bf16.gmra.mxu0 %vm1653_vm10, %v1962_v13 }
 0x60b   :  { %v2328_v25 = vpop.f32.mrf.mxu1 }
 0x60c   :  { %v1921_v2 = vadd.f32 %v2328_v25, %v4127_v57 }
 0x60d   :  { %v1912_v59 = vpop.f32.mrf.mxu1 }
 0x60e   :  { %v1913_v31 = vadd.f32 %v4127_v57, %v1912_v59  ;;  %v1953_v39 = vmax.f32 %v1921_v2, 0.0 }
 0x60f   :  { %v2329_v26 = vpop.f32.mrf.mxu1 }
 0x610   :  { %v1924_v23 = vadd.f32 %v2329_v26, %v4127_v57  ;;  %v1951_v29 = vmax.f32 %v1913_v31, 0.0 }
 0x611   :  { %v1915_v17 = vpop.f32.mrf.mxu1 }
 0x612   :  { %v1916_v50 = vadd.f32 %v4127_v57, %v1915_v17  ;;  %v1954_v15 = vmax.f32 %v1924_v23, 0.0 }
 0x614   :  { %v1952_v56 = vmax.f32 %v1916_v50, 0.0  ;;  %v1964_v27 = vpack.c.bf16 %v1954_v15, %v1953_v39 }
 0x616   :  { %v1963_v58 = vpack.c.bf16 %v1952_v56, %v1951_v29 }
 0x618   :  { %2346 = vmatprep.mubr.msk.bf16.mxu0 %vm1653_vm10, %v1963_v58 }
 0x619   :  { %2347 = vmatmul.mubr.msk.bf16.gmra.mxu0 %vm1653_vm10, %v1964_v27 }
 0x659   :  { %v2340_v61 = vpop.f32.mrf.mxu0 }
 0x65a   :  { %v2057_v46 = vadd.f32 %v2340_v61, %v4152_v34 }
 0x65b   :  { %v2048_v42 = vpop.f32.mrf.mxu0 }
 0x65c   :  { %2113 = vst [vmem:[#allocation2 + $0x10] sm:$0xff] %v2057_v46  ;;  %v2049_v9 = vadd.f32 %v4152_v34, %v2048_v42 }
 0x65d   :  { %v2332_v63 = vpop.f32.mrf.mxu1  ;;  %v2341_v14 = vpop.f32.mrf.mxu0 }
 0x65e   :  { %2111 = vst [vmem:[#allocation2] sm:$0xff] %v2049_v9  ;;  %v2060_v37 = vadd.f32 %v2341_v14, %v4152_v34  ;;  %v1937_v22 = vadd.f32 %v2332_v63, %v4127_v57 }
 0x65f   :  { %v1928_v21 = vpop.f32.mrf.mxu1  ;;  %v2051_v54 = vpop.f32.mrf.mxu0 }
 0x660   :  { %2114 = vst [vmem:[#allocation2 + $0x18] sm:$0xff] %v2060_v37  ;;  %v2052_v47 = vadd.f32 %v4152_v34, %v2051_v54  ;;  %v1929_v6 = vadd.f32 %v4127_v57, %v1928_v21  ;;  %v1957_v33 = vmax.f32 %v1937_v22, 0.0 }
 0x661   :  { %v2333_v18 = vpop.f32.mrf.mxu1  ;;  %v2344_v12 = vpop.f32.mrf.mxu0 }
 0x662   :  { %2112 = vst [vmem:[#allocation2 + $0x8] sm:$0xff] %v2052_v47  ;;  %v1940_v30 = vadd.f32 %v2333_v18, %v4127_v57  ;;  %v2073_v38 = vadd.f32 %v2344_v12, %v4152_v34  ;;  %v1955_v10 = vmax.f32 %v1929_v6, 0.0 }
 0x663   :  { %v1931_v48 = vpop.f32.mrf.mxu1  ;;  %v2064_v41 = vpop.f32.mrf.mxu0 }
 0x664   :  { %2117 = vst [vmem:[#allocation2 + $0x30] sm:$0xff] %v2073_v38  ;;  %v1932_v60 = vadd.f32 %v4127_v57, %v1931_v48  ;;  %v2065_v45 = vadd.f32 %v4152_v34, %v2064_v41  ;;  %v1958_v11 = vmax.f32 %v1940_v30, 0.0 }
 0x665   :  { %v2345_v40 = vpop.f32.mrf.mxu0 }
 0x666   :  { %v1956_v28 = vmax.f32 %v1932_v60, 0.0  ;;  %2115 = vst [vmem:[#allocation2 + $0x20] sm:$0xff] %v2065_v45  ;;  %v2076_v49 = vadd.f32 %v2345_v40, %v4152_v34  ;;  %v1966_v0 = vpack.c.bf16 %v1958_v11, %v1957_v33 }
 0x667   :  { %v2067_v8 = vpop.f32.mrf.mxu0 }
 0x668   :  { %v1965_v16 = vpack.c.bf16 %v1956_v28, %v1955_v10  ;;  %2118 = vst [vmem:[#allocation2 + $0x38] sm:$0xff] %v2076_v49  ;;  %v2068_v32 = vadd.f32 %v4152_v34, %v2067_v8 }
 0x66a   :  { %2116 = vst [vmem:[#allocation2 + $0x28] sm:$0xff] %v2068_v32  ;;  %2350 = vmatprep.mubr.msk.bf16.mxu1 %vm1653_vm10, %v1965_v16 }
 0x66b   :  { %2351 = vmatmul.mubr.msk.bf16.vlgmr.msra.gmra.mxu1 %vm1653_vm10, %v1966_v0 }
 0x6d9   :  { %v2348_v57 = vpop.f32.mrf.mxu0 }
 0x6da   :  { %v2089_v43 = vadd.f32 %v2348_v57, %v4152_v34 }
 0x6db   :  { %v2080_v3 = vpop.f32.mrf.mxu0 }
 0x6dc   :  { %2121 = vst [vmem:[#allocation2 + $0x50] sm:$0xff] %v2089_v43  ;;  %v2081_v19 = vadd.f32 %v4152_v34, %v2080_v3 }
 0x6dd   :  { %v2349_v1 = vpop.f32.mrf.mxu0 }
 0x6de   :  { %2119 = vst [vmem:[#allocation2 + $0x40] sm:$0xff] %v2081_v19  ;;  %v2092_v62 = vadd.f32 %v2349_v1, %v4152_v34 }
 0x6df   :  { %v2083_v5 = vpop.f32.mrf.mxu0 }
 0x6e0   :  { %2122 = vst [vmem:[#allocation2 + $0x58] sm:$0xff] %v2092_v62  ;;  %v2084_v55 = vadd.f32 %v4152_v34, %v2083_v5 }
 0x6e2   :  { %2120 = vst [vmem:[#allocation2 + $0x48] sm:$0xff] %v2084_v55 }
 0x72b   :  { %v2352_v53 = vpop.f32.mrf.mxu1 }
 0x72c   :  { %v2105_v52 = vadd.f32 %v2352_v53, %v4152_v34 }
 0x72d   :  { %v2096_v35 = vpop.f32.mrf.mxu1 }
 0x72e   :  { %2125 = vst [vmem:[#allocation2 + $0x70] sm:$0xff] %v2105_v52  ;;  %v2097_v4 = vadd.f32 %v4152_v34, %v2096_v35 }
 0x72f   :  { %v2353_v7 = vpop.f32.mrf.mxu1 }
 0x730   :  { %2123 = vst [vmem:[#allocation2 + $0x60] sm:$0xff] %v2097_v4  ;;  %v2108_v51 = vadd.f32 %v2353_v7, %v4152_v34 }
 0x731   :  { %v2099_v24 = vpop.f32.mrf.mxu1 }
 0x732   :  { %2126 = vst [vmem:[#allocation2 + $0x78] sm:$0xff] %v2108_v51  ;;  %v2100_v20 = vadd.f32 %v4152_v34, %v2099_v24 }
 0x734   :  { %2124 = vst [vmem:[#allocation2 + $0x68] sm:$0xff] %v2100_v20 }
 0x735   :  { %2606 = shalt.err (!%p2603_p4)
}
 0x736   :  { %s2626_s10 = smov 128   ;;  %s2627_s11 = smov 8  }
 0x737   :  { %2138 = dma.vmem_to_hbm [thread:$0]  %s2133_s29, 2048, %s4188_s9, [#allocation3], %s2626_s10, %s2626_s10, %s2627_s11  }
 0x738   :  { %2615 = dma.done.wait [#allocation3], 2048  }
 0x739   :  { %2616 = vsyncadd [#allocation3], 4294965248 }
 0x73a   :  { %2142 = vsyncpa [#allocation3], 1 }

</bundles_post_ra>
